<compile_context>
chip_gen: v5e
topology: v5e:2x2
jax: 0.10.0
libtpu: 0.0.40
codegen_flags: <defaults>
</compile_context>

<pallas_src>
import functools

import jax
import jax.numpy as jnp
from jax import lax
from jax.experimental import pallas as pl
from jax.experimental.pallas import tpu as pltpu

LANE = 128


# ------------------------------ fused kernel ------------------------------- #

def _fused_block_kernel(x_ref, w1_ref, b1_ref, wdw_ref, b2_ref, w3_ref, b3_ref,
                        o_ref, y1_ref,
                        *, stride, th_out, th_in, H, W, Wo, Cin, use_skip):
    # x_ref:  (1, Hp_ext, Wp, Cin)  spatially pre-padded input (bf16)
    # w1_ref: (Cin, Cexp_p) bf16    w3_ref: (Cexp_p, Cout_p) bf16  (BN scale folded in)
    # wdw_ref:(3, 3, Cexp_p) f32    b*: (1, C_p) folded BN bias f32
    # o_ref:  (1, th_out, Wo, Cout_p) f32
    # y1_ref: (th_in, Wp, Cexp_p) f32 VMEM scratch for the post-SiLU expand output
    t = pl.program_id(1)
    row0 = pl.multiple_of(t * (th_out * stride), th_out * stride)

    wp = y1_ref.shape[1]
    cexp_p = w1_ref.shape[1]
    cout_p = w3_ref.shape[1]

    # ---- stage 1: 1x1 expand conv (MXU, BN scale pre-folded) + bias + SiLU -- #
    xt = x_ref[0, pl.ds(row0, th_in), :, :]                 # (th_in, Wp, Cin) bf16
    y = jnp.dot(xt.reshape(th_in * wp, Cin), w1_ref[...],
                preferred_element_type=jnp.float32)
    y = y + b1_ref[...]
    # SiLU with a single EUP push: sigmoid(y) == 0.5 * (1 + tanh(y/2))
    y = y * (0.5 + 0.5 * jnp.tanh(0.5 * y))
    y1_ref[...] = y.reshape(th_in, wp, cexp_p)

    # ---- border-only zeroing (the depthwise conv's zero padding) ----------- #
    # At padding positions x == 0 so SiLU(bias) != 0; only the border rows/cols
    # actually read by the 3x3 taps need to be forced to exactly zero.
    zrow = jnp.zeros((1, wp, cexp_p), jnp.float32)
    zcol = jnp.zeros((th_in, 1, cexp_p), jnp.float32)
    y1_ref[:, 0:1, :] = zcol                                 # left padding column
    y1_ref[:, W + 1:W + 2, :] = zcol                         # right padding column

    @pl.when(t == 0)
    def _():                                                 # top padding row (global 0)
        y1_ref[0:1, :, :] = zrow

    bot = (H + 1) - row0                                     # bottom padding row (global H+1)
    @pl.when((bot >= 0) & (bot < th_in))
    def _():
        y1_ref[pl.ds(bot, 1), :, :] = zrow

    # ---- stage 2: depthwise 3x3 (VPU f32, BN scale pre-folded) + bias + ReLU6 #
    wdw = wdw_ref[...]                                       # (3, 3, Cexp_p) f32
    # Hoist the expensive W-axis (sublane) shifts out of the tap loop: 3 views, not 9.
    if stride == 1:
        cols = [y1_ref[:, pl.ds(dj, Wo), :] for dj in range(3)]
    else:
        cols = [y1_ref[:, pl.ds(dj, Wo, stride), :] for dj in range(3)]
    acc = jnp.zeros((th_out, Wo, cexp_p), jnp.float32)
    for di in range(3):
        for dj in range(3):
            patch = cols[dj][di:di + (th_out - 1) * stride + 1:stride, :, :]
            acc = acc + patch * wdw[di, dj, :]
    y2 = jnp.clip(acc + b2_ref[...].reshape(1, 1, cexp_p), 0.0, 6.0)

    # ---- stage 3: 1x1 project conv (MXU, BN scale pre-folded) + bias + skip - #
    z = jnp.dot(y2.reshape(th_out * Wo, cexp_p).astype(jnp.bfloat16), w3_ref[...],
                preferred_element_type=jnp.float32)
    z = (z + b3_ref[...]).reshape(th_out, Wo, cout_p)
    o_ref[...] = z[None]
    if use_skip:
        # Channel-sliced skip add into the first Cin lanes only (masked-lane store);
        # input channels are NOT padded up to Cout_p anymore.
        skip = x_ref[0, pl.ds(row0 + 1, th_out), 1:1 + Wo, :].astype(jnp.float32)
        o_ref[0, :, :, :Cin] = z[:, :, :Cin] + skip


# --------------------------------- wrapper --------------------------------- #

def rexnet_linearbottleneck_forward(x_nchw, params, *, stride, use_se=False,
                                    eps=1e-5):
    # TODO(synk): se_conv_block is undefined in the reference source; use_se=True
    #             is not implemented.
    assert not use_se
    N, Cin, H, W = x_nchw.shape
    w1 = params["w1"]            # (Cexp, Cin, 1, 1)
    wdw = params["wdw"]          # (Cexp, 1, 3, 3)
    w3 = params["w3"]            # (Cout, Cexp, 1, 1)
    Cexp = w1.shape[0]
    Cout = w3.shape[0]
    use_skip = (stride == 1) and (Cin <= Cout)

    rup = lambda c, m: ((c + m - 1) // m) * m
    Cexp_p = rup(Cexp, LANE)
    Cout_p = rup(Cout, LANE)

    # folded (eval-mode) BatchNorm: scale goes INTO the conv weights, bias stays.
    def fold(g, b, m, v):
        s = (g / jnp.sqrt(v + eps)).astype(jnp.float32)
        return s, (b - m * s).astype(jnp.float32)

    s1, b1 = fold(params["g1"], params["b1"], params["m1"], params["v1"])
    s2, b2 = fold(params["g2"], params["b2"], params["m2"], params["v2"])
    s3, b3 = fold(params["g3"], params["b3"], params["m3"], params["v3"])

    pad1 = lambda v, cp: jnp.pad(v, (0, cp - v.shape[0])).reshape(1, cp)
    b1k, b2k, b3k = pad1(b1, Cexp_p), pad1(b2, Cexp_p), pad1(b3, Cout_p)

    w1_k = jnp.pad((w1[:, :, 0, 0] * s1[:, None]).T,
                   ((0, 0), (0, Cexp_p - Cexp))).astype(jnp.bfloat16)          # (Cin, Cexp_p)
    wdw_k = jnp.pad(jnp.transpose(wdw[:, 0], (1, 2, 0)) * s2,
                    ((0, 0), (0, 0), (0, Cexp_p - Cexp))).astype(jnp.float32)  # (3,3,Cexp_p)
    w3_k = jnp.pad((w3[:, :, 0, 0] * s3[:, None]).T,
                   ((0, Cexp_p - Cexp), (0, Cout_p - Cout))).astype(jnp.bfloat16)  # (Cexp_p,Cout_p)

    # output spatial dims (3x3, padding=1)
    Ho = (H + 2 - 3) // stride + 1
    Wo = (W + 2 - 3) // stride + 1
    Wp = rup(W + 2, 8)                                  # sublane-aligned padded W

    # Row tile of the output: as large as a ~8 MiB y1 scratch budget allows,
    # but keep >= ~4 grid steps when possible (megacore / pipeline depth).
    TH_out = min(Ho, 32)
    y1_bytes = lambda th: ((th - 1) * stride + 3) * Wp * Cexp_p * 4
    while TH_out > 8 and y1_bytes(TH_out) > (8 << 20):
        TH_out = max(8, (TH_out + 1) // 2)
    while TH_out > 8 and N * pl.cdiv(Ho, TH_out) < 4:
        TH_out = max(8, (TH_out + 1) // 2)
    T = pl.cdiv(Ho, TH_out)
    TH_in = (TH_out - 1) * stride + 3                   # rows needed incl. halo
    Hp_ext = (T - 1) * TH_out * stride + TH_in          # padded-input rows needed

    # NCHW -> NHWC, halo pad and bf16 cast in one pass over the (small) input.
    # Input channels stay at their natural size: the MXU pads K internally and
    # only the output store needs to be lane-dense.
    x_pad = jnp.pad(jnp.transpose(x_nchw, (0, 2, 3, 1)),
                    ((0, 0), (1, Hp_ext - H - 1), (1, Wp - W - 1), (0, 0))
                    ).astype(jnp.bfloat16)

    # VMEM budget: double-buffered whole-image input block + y1 scratch + output.
    vmem_est = (2 * Hp_ext * Wp * Cin * 2
                + TH_in * Wp * Cexp_p * 4
                + 2 * TH_out * Wo * Cout_p * 4
                + 2 * (Cin * Cexp_p + Cexp_p * Cout_p) * 2
                + 2 * (9 + 2) * Cexp_p * 4 + 2 * Cout_p * 4)
    vmem_limit = int(min(max(2 * vmem_est, 32 << 20), 64 << 20))

    kernel = functools.partial(
        _fused_block_kernel, stride=stride, th_out=TH_out, th_in=TH_in,
        H=H, W=W, Wo=Wo, Cin=Cin, use_skip=use_skip)

    # TODO(synk): weight/bias blocks are grid-invariant; pipeline_mode=pl.Buffered(1)
    #             would drop their second VMEM buffer once that path is exercised.
    out = pl.pallas_call(
        kernel,
        out_shape=jax.ShapeDtypeStruct((N, Ho, Wo, Cout_p), jnp.float32),
        grid=(N, T),
        in_specs=[
            pl.BlockSpec((1, Hp_ext, Wp, Cin), lambda n, t: (n, 0, 0, 0)),
            pl.BlockSpec((Cin, Cexp_p), lambda n, t: (0, 0)),
            pl.BlockSpec((1, Cexp_p), lambda n, t: (0, 0)),
            pl.BlockSpec((3, 3, Cexp_p), lambda n, t: (0, 0, 0)),
            pl.BlockSpec((1, Cexp_p), lambda n, t: (0, 0)),
            pl.BlockSpec((Cexp_p, Cout_p), lambda n, t: (0, 0)),
            pl.BlockSpec((1, Cout_p), lambda n, t: (0, 0)),
        ],
        out_specs=pl.BlockSpec((1, TH_out, Wo, Cout_p), lambda n, t: (n, t, 0, 0)),
        scratch_shapes=[pltpu.VMEM((TH_in, Wp, Cexp_p), jnp.float32)],
        compiler_params=pltpu.CompilerParams(
            dimension_semantics=("parallel", "parallel"),
            vmem_limit_bytes=vmem_limit),
    )(x_pad, w1_k, b1k, wdw_k, b2k, w3_k, b3k)

    # drop lane padding, back to NCHW for the module's external contract.
    return jnp.transpose(out[..., :Cout], (0, 3, 1, 2))


# ---------------------- plain-JAX reference (for check) -------------------- #

def ref_forward(x, p, *, stride, eps=1e-5):
    def bn(y, g, b, m, v):
        s = g / jnp.sqrt(v + eps)
        return y * s[None, :, None, None] + (b - m * s)[None, :, None, None]

    Cexp = p["w1"].shape[0]
    y = lax.conv_general_dilated(x, p["w1"], (1, 1), "VALID",
                                 dimension_numbers=("NCHW", "OIHW", "NCHW"))
    y = bn(y, p["g1"], p["b1"], p["m1"], p["v1"])
    y = y * jax.nn.sigmoid(y)
    y = lax.conv_general_dilated(y, p["wdw"], (stride, stride), ((1, 1), (1, 1)),
                                 feature_group_count=Cexp,
                                 dimension_numbers=("NCHW", "OIHW", "NCHW"))
    y = bn(y, p["g2"], p["b2"], p["m2"], p["v2"])
    y = jnp.clip(y, 0.0, 6.0)
    y = lax.conv_general_dilated(y, p["w3"], (1, 1), "VALID",
                                 dimension_numbers=("NCHW", "OIHW", "NCHW"))
    y = bn(y, p["g3"], p["b3"], p["m3"], p["v3"])
    Cin, Cout = x.shape[1], y.shape[1]
    if stride == 1 and Cin <= Cout:
        y = y.at[:, :Cin].add(x)
    return y


# --------------------------------- main ------------------------------------ #

def init_params(key, in_ch, out_ch, expand_rate=6):
    Cexp = in_ch * expand_rate
    ks = jax.random.split(key, 16)
    f32 = jnp.float32
    return {
        "w1": jax.random.normal(ks[0], (Cexp, in_ch, 1, 1), f32) * 0.1,
        "g1": jax.random.uniform(ks[1], (Cexp,), f32, 0.5, 1.5),
        "b1": jax.random.normal(ks[2], (Cexp,), f32) * 0.1,
        "m1": jax.random.normal(ks[3], (Cexp,), f32) * 0.1,
        "v1": jax.random.uniform(ks[4], (Cexp,), f32, 0.5, 1.5),
        "wdw": jax.random.normal(ks[5], (Cexp, 1, 3, 3), f32) * 0.1,
        "g2": jax.random.uniform(ks[6], (Cexp,), f32, 0.5, 1.5),
        "b2": jax.random.normal(ks[7], (Cexp,), f32) * 0.1,
        "m2": jax.random.normal(ks[8], (Cexp,), f32) * 0.1,
        "v2": jax.random.uniform(ks[9], (Cexp,), f32, 0.5, 1.5),
        "w3": jax.random.normal(ks[10], (out_ch, Cexp, 1, 1), f32) * 0.1,
        "g3": jax.random.uniform(ks[11], (out_ch,), f32, 0.5, 1.5),
        "b3": jax.random.normal(ks[12], (out_ch,), f32) * 0.1,
        "m3": jax.random.normal(ks[13], (out_ch,), f32) * 0.1,
        "v3": jax.random.uniform(ks[14], (out_ch,), f32, 0.5, 1.5),
    }


if __name__ == "__main__":
    N, Cin, H, W = 2, 4, 16, 16
    Cout, stride = 8, 1                       # use_skip = True (stride 1, Cin <= Cout)

    key = jax.random.PRNGKey(0)
    kx, kp = jax.random.split(key)
    x = jax.random.normal(kx, (N, Cin, H, W), jnp.float32)
    params = init_params(kp, Cin, Cout)

    fwd = jax.jit(functools.partial(rexnet_linearbottleneck_forward,
                                    stride=stride, use_se=False))
    out = jax.block_until_ready(fwd(x, params))

    ref = jax.block_until_ready(ref_forward(x, params, stride=stride))
    assert out.shape == ref.shape == (N, Cout, H, W)
    # tolerance sized for bf16 MXU operands / bf16 input image vs f32 reference
    assert jnp.allclose(out, ref, atol=3e-2, rtol=3e-2), \
        f"max err = {jnp.max(jnp.abs(out - ref))}"

    print("KERNEL_OK")
</pallas_src>

<mosaic_0001>
module attributes {stable_mosaic.version = 11 : i64} {
  func.func @_fused_block_kernel(%arg0: i32, %arg1: i32, %arg2: memref<1x18x24x4xbf16, #tpu.memory_space<vmem>>, %arg3: memref<4x128xbf16, #tpu.memory_space<vmem>>, %arg4: memref<1x128xf32, #tpu.memory_space<vmem>>, %arg5: memref<3x3x128xf32, #tpu.memory_space<vmem>>, %arg6: memref<1x128xf32, #tpu.memory_space<vmem>>, %arg7: memref<128x128xbf16, #tpu.memory_space<vmem>>, %arg8: memref<1x128xf32, #tpu.memory_space<vmem>>, %arg9: memref<1x8x16x128xf32, #tpu.memory_space<vmem>>, %arg10: memref<10x24x128xf32, #tpu.memory_space<vmem>>) attributes {dimension_semantics = [#tpu.dimension_semantics<parallel>, #tpu.dimension_semantics<parallel>], iteration_bounds = array<i64: 2, 2>, scalar_prefetch = 0 : i64, scratch_operands = 1 : i64, tpu.core_type = #tpu.core_type<tc>, window_params = [{transform_indices = @transform_0, window_bounds = array<i64: 1, 18, 24, 4>}, {pipeline_mode = #tpu.pipeline_mode<synchronous>, transform_indices = @transform_1, window_bounds = array<i64: 4, 128>}, {pipeline_mode = #tpu.pipeline_mode<synchronous>, transform_indices = @transform_2, window_bounds = array<i64: 1, 128>}, {pipeline_mode = #tpu.pipeline_mode<synchronous>, transform_indices = @transform_3, window_bounds = array<i64: 3, 3, 128>}, {pipeline_mode = #tpu.pipeline_mode<synchronous>, transform_indices = @transform_4, window_bounds = array<i64: 1, 128>}, {pipeline_mode = #tpu.pipeline_mode<synchronous>, transform_indices = @transform_5, window_bounds = array<i64: 128, 128>}, {pipeline_mode = #tpu.pipeline_mode<synchronous>, transform_indices = @transform_6, window_bounds = array<i64: 1, 128>}, {transform_indices = @transform_7, window_bounds = array<i64: 1, 8, 16, 128>}]} {
    %c8_i32 = arith.constant 8 : i32
    %0 = arith.muli %arg1, %c8_i32 : i32
    %1 = tpu.assume_multiple %0, 8 : i32
    %c0 = arith.constant 0 : index
    %2 = arith.index_cast %1 : i32 to index
    %c0_0 = arith.constant 0 : index
    %c0_1 = arith.constant 0 : index
    %3 = vector.load %arg2[%c0, %2, %c0_0, %c0_1] : memref<1x18x24x4xbf16, #tpu.memory_space<vmem>>, vector<1x10x24x4xbf16>
    %4 = vector.shape_cast %3 : vector<1x10x24x4xbf16> to vector<10x24x4xbf16>
    %5 = vector.shape_cast %4 : vector<10x24x4xbf16> to vector<240x4xbf16>
    %c0_2 = arith.constant 0 : index
    %c0_3 = arith.constant 0 : index
    %6 = vector.load %arg3[%c0_2, %c0_3] : memref<4x128xbf16, #tpu.memory_space<vmem>>, vector<4x128xbf16>
    %cst = arith.constant dense<0.000000e+00> : vector<240x128xf32>
    %7 = tpu.matmul %5, %6, %cst {dimension_numbers = #tpu.dot_dimension_numbers<[1], [0], [0], [1], [0, 0, 1, 1], [], []>} : vector<240x4xbf16>, vector<4x128xbf16>, vector<240x128xf32> -> vector<240x128xf32>
    %c0_4 = arith.constant 0 : index
    %c0_5 = arith.constant 0 : index
    %8 = vector.load %arg4[%c0_4, %c0_5] : memref<1x128xf32, #tpu.memory_space<vmem>>, vector<1x128xf32>
    %9 = vector.broadcast %8 : vector<1x128xf32> to vector<240x128xf32>
    %10 = arith.addf %7, %9 : vector<240x128xf32>
    %cst_6 = arith.constant 5.000000e-01 : f32
    %11 = vector.broadcast %cst_6 : f32 to vector<240x128xf32>
    %12 = arith.mulf %11, %10 : vector<240x128xf32>
    %13 = math.tanh %12 : vector<240x128xf32>
    %cst_7 = arith.constant 5.000000e-01 : f32
    %14 = vector.broadcast %cst_7 : f32 to vector<240x128xf32>
    %15 = arith.mulf %14, %13 : vector<240x128xf32>
    %cst_8 = arith.constant 5.000000e-01 : f32
    %16 = vector.broadcast %cst_8 : f32 to vector<240x128xf32>
    %17 = arith.addf %16, %15 : vector<240x128xf32>
    %18 = arith.mulf %10, %17 : vector<240x128xf32>
    %19 = vector.shape_cast %18 : vector<240x128xf32> to vector<10x24x128xf32>
    %c0_9 = arith.constant 0 : index
    %c0_10 = arith.constant 0 : index
    %c0_11 = arith.constant 0 : index
    %20 = vector.load %arg10[%c0_9, %c0_10, %c0_11] : memref<10x24x128xf32, #tpu.memory_space<vmem>>, vector<10x24x128xf32>
    tpu.vector_store %arg10[%c0_9, %c0_10, %c0_11], %19 {strides = array<i32>} : memref<10x24x128xf32, #tpu.memory_space<vmem>>, vector<10x24x128xf32>,
    %cst_12 = arith.constant 0.000000e+00 : f32
    %21 = vector.broadcast %cst_12 : f32 to vector<1x24x128xf32>
    %cst_13 = arith.constant 0.000000e+00 : f32
    %22 = vector.broadcast %cst_13 : f32 to vector<10x1x128xf32>
    %c0_14 = arith.constant 0 : index
    %c0_15 = arith.constant 0 : index
    %c0_16 = arith.constant 0 : index
    %23 = vector.load %arg10[%c0_14, %c0_15, %c0_16] : memref<10x24x128xf32, #tpu.memory_space<vmem>>, vector<10x1x128xf32>
    tpu.vector_store %arg10[%c0_14, %c0_15, %c0_16], %22 {strides = array<i32>} : memref<10x24x128xf32, #tpu.memory_space<vmem>>, vector<10x1x128xf32>,
    %c0_17 = arith.constant 0 : index
    %c17 = arith.constant 17 : index
    %c0_18 = arith.constant 0 : index
    %24 = vector.load %arg10[%c0_17, %c17, %c0_18] : memref<10x24x128xf32, #tpu.memory_space<vmem>>, vector<10x1x128xf32>
    tpu.vector_store %arg10[%c0_17, %c17, %c0_18], %22 {strides = array<i32>} : memref<10x24x128xf32, #tpu.memory_space<vmem>>, vector<10x1x128xf32>,
    %c0_i32 = arith.constant 0 : i32
    %25 = arith.cmpi eq, %arg1, %c0_i32 : i32
    %26 = arith.extui %25 : i1 to i32
    %c0_i32_19 = arith.constant 0 : i32
    %27 = arith.cmpi ne, %26, %c0_i32_19 : i32
    scf.if %27 {
      %c0_53 = arith.constant 0 : index
      %c0_54 = arith.constant 0 : index
      %c0_55 = arith.constant 0 : index
      %130 = vector.load %arg10[%c0_53, %c0_54, %c0_55] : memref<10x24x128xf32, #tpu.memory_space<vmem>>, vector<1x24x128xf32>
      tpu.vector_store %arg10[%c0_53, %c0_54, %c0_55], %21 {strides = array<i32>} : memref<10x24x128xf32, #tpu.memory_space<vmem>>, vector<1x24x128xf32>,
    } else {
    }
    %c17_i32 = arith.constant 17 : i32
    %28 = arith.subi %c17_i32, %1 : i32
    %c0_i32_20 = arith.constant 0 : i32
    %29 = arith.cmpi sge, %28, %c0_i32_20 : i32
    %c10_i32 = arith.constant 10 : i32
    %30 = arith.cmpi slt, %28, %c10_i32 : i32
    %31 = arith.andi %29, %30 : i1
    %32 = arith.extui %31 : i1 to i32
    %c0_i32_21 = arith.constant 0 : i32
    %33 = arith.cmpi ne, %32, %c0_i32_21 : i32
    scf.if %33 {
      %130 = arith.index_cast %28 : i32 to index
      %c0_53 = arith.constant 0 : index
      %c0_54 = arith.constant 0 : index
      %131 = vector.load %arg10[%130, %c0_53, %c0_54] : memref<10x24x128xf32, #tpu.memory_space<vmem>>, vector<1x24x128xf32>
      tpu.vector_store %arg10[%130, %c0_53, %c0_54], %21 {strides = array<i32>} : memref<10x24x128xf32, #tpu.memory_space<vmem>>, vector<1x24x128xf32>,
    } else {
    }
    %c0_22 = arith.constant 0 : index
    %c0_23 = arith.constant 0 : index
    %c0_24 = arith.constant 0 : index
    %34 = vector.load %arg5[%c0_22, %c0_23, %c0_24] : memref<3x3x128xf32, #tpu.memory_space<vmem>>, vector<3x3x128xf32>
    %c0_25 = arith.constant 0 : index
    %c0_26 = arith.constant 0 : index
    %c0_27 = arith.constant 0 : index
    %35 = vector.load %arg10[%c0_25, %c0_26, %c0_27] : memref<10x24x128xf32, #tpu.memory_space<vmem>>, vector<10x16x128xf32>
    %c0_28 = arith.constant 0 : index
    %c1 = arith.constant 1 : index
    %c0_29 = arith.constant 0 : index
    %36 = vector.load %arg10[%c0_28, %c1, %c0_29] : memref<10x24x128xf32, #tpu.memory_space<vmem>>, vector<10x16x128xf32>
    %c0_30 = arith.constant 0 : index
    %c2 = arith.constant 2 : index
    %c0_31 = arith.constant 0 : index
    %37 = vector.load %arg10[%c0_30, %c2, %c0_31] : memref<10x24x128xf32, #tpu.memory_space<vmem>>, vector<10x16x128xf32>
    %cst_32 = arith.constant 0.000000e+00 : f32
    %38 = vector.broadcast %cst_32 : f32 to vector<8x16x128xf32>
    %39 = vector.extract_strided_slice %35 {offsets = [0, 0, 0], sizes = [8, 16, 128], strides = [1, 1, 1]} : vector<10x16x128xf32> to vector<8x16x128xf32>
    %40 = vector.extract_strided_slice %34 {offsets = [0, 0, 0], sizes = [1, 1, 128], strides = [1, 1, 1]} : vector<3x3x128xf32> to vector<1x1x128xf32>
    %41 = vector.shape_cast %40 : vector<1x1x128xf32> to vector<128xf32>
    %42 = vector.shape_cast %41 : vector<128xf32> to vector<1x1x128xf32>
    %43 = vector.broadcast %42 : vector<1x1x128xf32> to vector<8x16x128xf32>
    %44 = arith.mulf %39, %43 : vector<8x16x128xf32>
    %45 = arith.addf %38, %44 : vector<8x16x128xf32>
    %46 = vector.extract_strided_slice %36 {offsets = [0, 0, 0], sizes = [8, 16, 128], strides = [1, 1, 1]} : vector<10x16x128xf32> to vector<8x16x128xf32>
    %47 = vector.extract_strided_slice %34 {offsets = [0, 1, 0], sizes = [1, 1, 128], strides = [1, 1, 1]} : vector<3x3x128xf32> to vector<1x1x128xf32>
    %48 = vector.shape_cast %47 : vector<1x1x128xf32> to vector<128xf32>
    %49 = vector.shape_cast %48 : vector<128xf32> to vector<1x1x128xf32>
    %50 = vector.broadcast %49 : vector<1x1x128xf32> to vector<8x16x128xf32>
    %51 = arith.mulf %46, %50 : vector<8x16x128xf32>
    %52 = arith.addf %45, %51 : vector<8x16x128xf32>
    %53 = vector.extract_strided_slice %37 {offsets = [0, 0, 0], sizes = [8, 16, 128], strides = [1, 1, 1]} : vector<10x16x128xf32> to vector<8x16x128xf32>
    %54 = vector.extract_strided_slice %34 {offsets = [0, 2, 0], sizes = [1, 1, 128], strides = [1, 1, 1]} : vector<3x3x128xf32> to vector<1x1x128xf32>
    %55 = vector.shape_cast %54 : vector<1x1x128xf32> to vector<128xf32>
    %56 = vector.shape_cast %55 : vector<128xf32> to vector<1x1x128xf32>
    %57 = vector.broadcast %56 : vector<1x1x128xf32> to vector<8x16x128xf32>
    %58 = arith.mulf %53, %57 : vector<8x16x128xf32>
    %59 = arith.addf %52, %58 : vector<8x16x128xf32>
    %60 = vector.extract_strided_slice %35 {offsets = [1, 0, 0], sizes = [8, 16, 128], strides = [1, 1, 1]} : vector<10x16x128xf32> to vector<8x16x128xf32>
    %61 = vector.extract_strided_slice %34 {offsets = [1, 0, 0], sizes = [1, 1, 128], strides = [1, 1, 1]} : vector<3x3x128xf32> to vector<1x1x128xf32>
    %62 = vector.shape_cast %61 : vector<1x1x128xf32> to vector<128xf32>
    %63 = vector.shape_cast %62 : vector<128xf32> to vector<1x1x128xf32>
    %64 = vector.broadcast %63 : vector<1x1x128xf32> to vector<8x16x128xf32>
    %65 = arith.mulf %60, %64 : vector<8x16x128xf32>
    %66 = arith.addf %59, %65 : vector<8x16x128xf32>
    %67 = vector.extract_strided_slice %36 {offsets = [1, 0, 0], sizes = [8, 16, 128], strides = [1, 1, 1]} : vector<10x16x128xf32> to vector<8x16x128xf32>
    %68 = vector.extract_strided_slice %34 {offsets = [1, 1, 0], sizes = [1, 1, 128], strides = [1, 1, 1]} : vector<3x3x128xf32> to vector<1x1x128xf32>
    %69 = vector.shape_cast %68 : vector<1x1x128xf32> to vector<128xf32>
    %70 = vector.shape_cast %69 : vector<128xf32> to vector<1x1x128xf32>
    %71 = vector.broadcast %70 : vector<1x1x128xf32> to vector<8x16x128xf32>
    %72 = arith.mulf %67, %71 : vector<8x16x128xf32>
    %73 = arith.addf %66, %72 : vector<8x16x128xf32>
    %74 = vector.extract_strided_slice %37 {offsets = [1, 0, 0], sizes = [8, 16, 128], strides = [1, 1, 1]} : vector<10x16x128xf32> to vector<8x16x128xf32>
    %75 = vector.extract_strided_slice %34 {offsets = [1, 2, 0], sizes = [1, 1, 128], strides = [1, 1, 1]} : vector<3x3x128xf32> to vector<1x1x128xf32>
    %76 = vector.shape_cast %75 : vector<1x1x128xf32> to vector<128xf32>
    %77 = vector.shape_cast %76 : vector<128xf32> to vector<1x1x128xf32>
    %78 = vector.broadcast %77 : vector<1x1x128xf32> to vector<8x16x128xf32>
    %79 = arith.mulf %74, %78 : vector<8x16x128xf32>
    %80 = arith.addf %73, %79 : vector<8x16x128xf32>
    %81 = vector.extract_strided_slice %35 {offsets = [2, 0, 0], sizes = [8, 16, 128], strides = [1, 1, 1]} : vector<10x16x128xf32> to vector<8x16x128xf32>
    %82 = vector.extract_strided_slice %34 {offsets = [2, 0, 0], sizes = [1, 1, 128], strides = [1, 1, 1]} : vector<3x3x128xf32> to vector<1x1x128xf32>
    %83 = vector.shape_cast %82 : vector<1x1x128xf32> to vector<128xf32>
    %84 = vector.shape_cast %83 : vector<128xf32> to vector<1x1x128xf32>
    %85 = vector.broadcast %84 : vector<1x1x128xf32> to vector<8x16x128xf32>
    %86 = arith.mulf %81, %85 : vector<8x16x128xf32>
    %87 = arith.addf %80, %86 : vector<8x16x128xf32>
    %88 = vector.extract_strided_slice %36 {offsets = [2, 0, 0], sizes = [8, 16, 128], strides = [1, 1, 1]} : vector<10x16x128xf32> to vector<8x16x128xf32>
    %89 = vector.extract_strided_slice %34 {offsets = [2, 1, 0], sizes = [1, 1, 128], strides = [1, 1, 1]} : vector<3x3x128xf32> to vector<1x1x128xf32>
    %90 = vector.shape_cast %89 : vector<1x1x128xf32> to vector<128xf32>
    %91 = vector.shape_cast %90 : vector<128xf32> to vector<1x1x128xf32>
    %92 = vector.broadcast %91 : vector<1x1x128xf32> to vector<8x16x128xf32>
    %93 = arith.mulf %88, %92 : vector<8x16x128xf32>
    %94 = arith.addf %87, %93 : vector<8x16x128xf32>
    %95 = vector.extract_strided_slice %37 {offsets = [2, 0, 0], sizes = [8, 16, 128], strides = [1, 1, 1]} : vector<10x16x128xf32> to vector<8x16x128xf32>
    %96 = vector.extract_strided_slice %34 {offsets = [2, 2, 0], sizes = [1, 1, 128], strides = [1, 1, 1]} : vector<3x3x128xf32> to vector<1x1x128xf32>
    %97 = vector.shape_cast %96 : vector<1x1x128xf32> to vector<128xf32>
    %98 = vector.shape_cast %97 : vector<128xf32> to vector<1x1x128xf32>
    %99 = vector.broadcast %98 : vector<1x1x128xf32> to vector<8x16x128xf32>
    %100 = arith.mulf %95, %99 : vector<8x16x128xf32>
    %101 = arith.addf %94, %100 : vector<8x16x128xf32>
    %c0_33 = arith.constant 0 : index
    %c0_34 = arith.constant 0 : index
    %102 = vector.load %arg6[%c0_33, %c0_34] : memref<1x128xf32, #tpu.memory_space<vmem>>, vector<1x128xf32>
    %103 = vector.shape_cast %102 : vector<1x128xf32> to vector<1x1x128xf32>
    %104 = vector.broadcast %103 : vector<1x1x128xf32> to vector<8x16x128xf32>
    %105 = arith.addf %101, %104 : vector<8x16x128xf32>
    %cst_35 = arith.constant 0.000000e+00 : f32
    %cst_36 = arith.constant 6.000000e+00 : f32
    %106 = vector.broadcast %cst_35 : f32 to vector<8x16x128xf32>
    %107 = arith.maximumf %106, %105 : vector<8x16x128xf32>
    %108 = vector.broadcast %cst_36 : f32 to vector<8x16x128xf32>
    %109 = arith.minimumf %108, %107 : vector<8x16x128xf32>
    %110 = vector.shape_cast %109 : vector<8x16x128xf32> to vector<128x128xf32>
    %111 = arith.truncf %110 : vector<128x128xf32> to vector<128x128xbf16>
    %c0_37 = arith.constant 0 : index
    %c0_38 = arith.constant 0 : index
    %112 = vector.load %arg7[%c0_37, %c0_38] : memref<128x128xbf16, #tpu.memory_space<vmem>>, vector<128x128xbf16>
    %cst_39 = arith.constant dense<0.000000e+00> : vector<128x128xf32>
    %113 = tpu.matmul %111, %112, %cst_39 {dimension_numbers = #tpu.dot_dimension_numbers<[1], [0], [0], [1], [0, 0, 1, 1], [], []>} : vector<128x128xbf16>, vector<128x128xbf16>, vector<128x128xf32> -> vector<128x128xf32>
    %c0_40 = arith.constant 0 : index
    %c0_41 = arith.constant 0 : index
    %114 = vector.load %arg8[%c0_40, %c0_41] : memref<1x128xf32, #tpu.memory_space<vmem>>, vector<1x128xf32>
    %115 = vector.broadcast %114 : vector<1x128xf32> to vector<128x128xf32>
    %116 = arith.addf %113, %115 : vector<128x128xf32>
    %117 = vector.shape_cast %116 : vector<128x128xf32> to vector<8x16x128xf32>
    %118 = vector.shape_cast %117 : vector<8x16x128xf32> to vector<1x8x16x128xf32>
    %c0_42 = arith.constant 0 : index
    %c0_43 = arith.constant 0 : index
    %c0_44 = arith.constant 0 : index
    %c0_45 = arith.constant 0 : index
    %119 = vector.load %arg9[%c0_42, %c0_43, %c0_44, %c0_45] : memref<1x8x16x128xf32, #tpu.memory_space<vmem>>, vector<1x8x16x128xf32>
    tpu.vector_store %arg9[%c0_42, %c0_43, %c0_44, %c0_45], %118 {strides = array<i32>} : memref<1x8x16x128xf32, #tpu.memory_space<vmem>>, vector<1x8x16x128xf32>,
    %c1_i32 = arith.constant 1 : i32
    %120 = arith.addi %1, %c1_i32 : i32
    %c0_46 = arith.constant 0 : index
    %121 = arith.index_cast %120 : i32 to index
    %c1_47 = arith.constant 1 : index
    %c0_48 = arith.constant 0 : index
    %122 = vector.load %arg2[%c0_46, %121, %c1_47, %c0_48] : memref<1x18x24x4xbf16, #tpu.memory_space<vmem>>, vector<1x8x16x4xbf16>
    %123 = vector.shape_cast %122 : vector<1x8x16x4xbf16> to vector<8x16x4xbf16>
    %124 = arith.extf %123 : vector<8x16x4xbf16> to vector<8x16x4xf32>
    %125 = vector.extract_strided_slice %117 {offsets = [0, 0, 0], sizes = [8, 16, 4], strides = [1, 1, 1]} : vector<8x16x128xf32> to vector<8x16x4xf32>
    %126 = arith.addf %125, %124 : vector<8x16x4xf32>
    %c0_49 = arith.constant 0 : index
    %c0_50 = arith.constant 0 : index
    %c0_51 = arith.constant 0 : index
    %c0_52 = arith.constant 0 : index
    %127 = vector.load %arg9[%c0_49, %c0_50, %c0_51, %c0_52] : memref<1x8x16x128xf32, #tpu.memory_space<vmem>>, vector<1x8x16x4xf32>
    %128 = vector.shape_cast %127 : vector<1x8x16x4xf32> to vector<8x16x4xf32>
    %129 = vector.shape_cast %126 : vector<8x16x4xf32> to vector<1x8x16x4xf32>
    tpu.vector_store %arg9[%c0_49, %c0_50, %c0_51, %c0_52], %129 {strides = array<i32>} : memref<1x8x16x128xf32, #tpu.memory_space<vmem>>, vector<1x8x16x4xf32>,
    return
  }
  func.func @transform_0(%arg0: i32, %arg1: i32) -> (i32, i32, i32, i32) {
    %c0_i32 = arith.constant 0 : i32
    %c0_i32_0 = arith.constant 0 : i32
    %c0_i32_1 = arith.constant 0 : i32
    %c0_i32_2 = arith.constant 0 : i32
    return %arg0, %c0_i32, %c0_i32_0, %c0_i32_1 : i32, i32, i32, i32
  }
  func.func @transform_1(%arg0: i32, %arg1: i32) -> (i32, i32) {
    %c0_i32 = arith.constant 0 : i32
    %c0_i32_0 = arith.constant 0 : i32
    %c0_i32_1 = arith.constant 0 : i32
    return %c0_i32, %c0_i32_0 : i32, i32
  }
  func.func @transform_2(%arg0: i32, %arg1: i32) -> (i32, i32) {
    %c0_i32 = arith.constant 0 : i32
    %c0_i32_0 = arith.constant 0 : i32
    %c0_i32_1 = arith.constant 0 : i32
    return %c0_i32, %c0_i32_0 : i32, i32
  }
  func.func @transform_3(%arg0: i32, %arg1: i32) -> (i32, i32, i32) {
    %c0_i32 = arith.constant 0 : i32
    %c0_i32_0 = arith.constant 0 : i32
    %c0_i32_1 = arith.constant 0 : i32
    %c0_i32_2 = arith.constant 0 : i32
    return %c0_i32, %c0_i32_0, %c0_i32_1 : i32, i32, i32
  }
  func.func @transform_4(%arg0: i32, %arg1: i32) -> (i32, i32) {
    %c0_i32 = arith.constant 0 : i32
    %c0_i32_0 = arith.constant 0 : i32
    %c0_i32_1 = arith.constant 0 : i32
    return %c0_i32, %c0_i32_0 : i32, i32
  }
  func.func @transform_5(%arg0: i32, %arg1: i32) -> (i32, i32) {
    %c0_i32 = arith.constant 0 : i32
    %c0_i32_0 = arith.constant 0 : i32
    %c0_i32_1 = arith.constant 0 : i32
    return %c0_i32, %c0_i32_0 : i32, i32
  }
  func.func @transform_6(%arg0: i32, %arg1: i32) -> (i32, i32) {
    %c0_i32 = arith.constant 0 : i32
    %c0_i32_0 = arith.constant 0 : i32
    %c0_i32_1 = arith.constant 0 : i32
    return %c0_i32, %c0_i32_0 : i32, i32
  }
  func.func @transform_7(%arg0: i32, %arg1: i32) -> (i32, i32, i32, i32) {
    %c0_i32 = arith.constant 0 : i32
    %c0_i32_0 = arith.constant 0 : i32
    %c0_i32_1 = arith.constant 0 : i32
    return %arg0, %arg1, %c0_i32, %c0_i32_0 : i32, i32, i32, i32
  }
}

</mosaic_0001>

<bundles_post_ra>
// kernel: rexnet_linearbottleneck_forward.1
= control target key start
LH: loop header
LB: loop body
LE: loop exit
PB: predicated region body
PF: predicated region fallthrough
CT: control target
= control target key end

     0   :  { %s1980_s24 = smov 0   ;;  %s1982_s25 = smov 0   ;;  %s2663_s0 = inlined_call_operand.vmem [shape: bf16[2,18,24,4], index: 0, kind: input, shape index: {}]   ;;  %s2664_s1 = inlined_call_operand.vmem [shape: bf16[4,128], index: 1, kind: input, shape index: {}]   ;;  %s2665_s2 = inlined_call_operand.vmem [shape: f32[1,128], index: 2, kind: input, shape index: {}]   ;;  %s2666_s3 = inlined_call_operand.vmem [shape: f32[3,3,128], index: 3, kind: input, shape index: {}]   ;;  %s2667_s4 = inlined_call_operand.vmem [shape: f32[1,128], index: 4, kind: input, shape index: {}]   ;;  %s2668_s5 = inlined_call_operand.vmem [shape: bf16[128,128], index: 5, kind: input, shape index: {}]   ;;  %s2669_s6 = inlined_call_operand.vmem [shape: f32[1,128], index: 6, kind: input, shape index: {}]   ;;  %s2670_s7 = inlined_call_operand.vmem [shape: f32[2,16,16,128], index: 7, kind: output, shape index: {}]  }
   0x1   :  { %s1984_s26 = smov 0   ;;  %s1986_s27 = smov 0  }
   0x2   :  { %s1988_s28 = smov 0  }
   0x3 LB: > { %s26_s29 = sadd.s32 1, %s1927_s26  ;;  %s29_s30 = sadd.s32 1, %s1931_s27  ;;  %s1935_s28 = sphi %s1988_s28, %s17_s28   ;;  %s1931_s27 = sphi %s1986_s27, %s2702_s27   ;;  %s1927_s26 = sphi %s1984_s26, %s2701_s26   ;;  %s1923_s25 = sphi %s1982_s25, %s2700_s25   ;;  %s1919_s24 = sphi %s1980_s24, %s2699_s24  }
   0x4   : > { %p27_p0 = scmp.ge.s32.totalorder %s26_s29, 2  ;;  %p1592_p1 = scmp.ge.s32.totalorder %s1935_s28, 1 }
   0x5   : > { %p251_p2 = scmp.lt.s32.totalorder %s1935_s28, 5 }
   0x6   : > { %s2704_s29 = smov (%p27_p0, %s26_s29), 0  ;;  %s2706_s30 = smov (!%p27_p0, %s29_s30), %s1931_s27 }
   0x7   : > { %p252_p3 = pnand %p1592_p1, %p251_p2  ;;  %p31_p4 = scmp.ge.s32.totalorder %s2706_s30, 2 }
   0x9   : > { %s2708_s30 = smov (%p31_p4, %s2706_s30), 0  ;;  %255 = sbr.rel (%p252_p3) target bundleno = 556 (0x22c), region = 48 }
   0xe   : > { %v339_v0 = vld [vmem:[%s2664_s1] sm:$0x3]  ;;  %vm465_vm0 = vcmask 1041408   ;;  %p288_p5 = scmp.lt.s32.totalorder %s1923_s25, 1  ;;  %s2016_s10 = sshll.u32 %s1919_s24, 3  ;;  %vm419_vm1 = vcmask 31744  }
   0xf   : > { %v467_v1 = vsel %vm465_vm0, %v339_v0, 0  ;;  %p296_p6 = scmp.lt.s32.totalorder %s2016_s10, 15  ;;  %s1737_s11 = smul.u32 96, %s1919_s24  ;;  %v2064_v17 = vld [vmem:[%s2665_s2] ss:$0 sm:$0xff]  ;;  %v1937_v39 = vmov 0.0  }
  0x10   : > { %1781 = vmatpush.bf16.msra.mxu2 %v467_v1  ;;  %476 = vmatpush.bf16.msra.mxu0 %v467_v1  ;;  %s2710_s25 = smov (!%p288_p5, %s1923_s25), 1  ;;  %p1676_p7 = scmp.ne.s32.totalorder %s1919_s24, 0 }
  0x11   : > { %s297_s12 = scalar_select %p296_p6, %s2016_s10, 15 }
  0x12   : > { %s1790_s13 = smul.u32 216, %s2710_s25  ;;  %s1596_s14 = sshll.u32 %s2710_s25, 5 }
  0x13   : > { %s1595_s15 = sshll.u32 %s297_s12, 1 }
  0x14   : > { %s292_s18 = scalar_lea.vmem %s2663_s0, %s1790_s13  ;;  %s300_s19 = sadd.s32 %s1596_s14, %s1595_s15 }
  0x15   : > { %s1597_s20 = sshll.u32 %s300_s19, 3  ;;  %s2024_s21 = scalar_lea.vmem %s292_s18, %s1737_s11 }
  0x16   : > { %s2029_s25 = scalar_lea.vmem %s2670_s7, %s1597_s20  ;;  %v1745_v2 = vld [vmem:[%s2024_s21 + $0x38] sm:$0xff]  ;;  %v1738_v3 = vld [vmem:[%s2024_s21] sm:$0xff]  ;;  %v1739_v5 = vld [vmem:[%s2024_s21 + $0x8] sm:$0xff] }
  0x17   : > { %1668 = vmatmul.msk.bf16.vlgmr.msra.gmra.mxu2 %vm419_vm1, %v1745_v2  ;;  %1661 = vmatmul.msk.bf16.vlgmr.msra.gmra.mxu0 %vm419_vm1, %v1738_v3  ;;  %v1746_v4 = vld [vmem:[%s2024_s21 + $0x40] sm:$0xff]  ;;  %v1747_v6 = vld [vmem:[%s2024_s21 + $0x48] sm:$0xff]  ;;  %v1740_v7 = vld [vmem:[%s2024_s21 + $0x10] sm:$0xff] }
  0x18   : > { %v1748_v8 = vld [vmem:[%s2024_s21 + $0x50] sm:$0xff]  ;;  %v1741_v9 = vld [vmem:[%s2024_s21 + $0x18] sm:$0xff]  ;;  %v1742_v11 = vld [vmem:[%s2024_s21 + $0x20] sm:$0xff] }
  0x19   : > { %v1749_v10 = vld [vmem:[%s2024_s21 + $0x58] sm:$0xff]  ;;  %v1750_v12 = vld [vmem:[%s2024_s21 + $0x60] sm:$0xff]  ;;  %v1743_v13 = vld [vmem:[%s2024_s21 + $0x28] sm:$0xff] }
  0x1a   : > { %v1751_v14 = vld [vmem:[%s2024_s21 + $0x68] sm:$0xff]  ;;  %v1744_v15 = vld [vmem:[%s2024_s21 + $0x30] sm:$0xff] }
  0x1b   : > { %v1752_v16 = vld [vmem:[%s2024_s21 + $0x70] sm:$0xff] }
  0x27   : > { %1669 = vmatmul.msk.bf16.gmra.mxu2 %vm419_vm1, %v1746_v4  ;;  %1662 = vmatmul.msk.bf16.gmra.mxu0 %vm419_vm1, %v1739_v5 }
  0x37   : > { %1670 = vmatmul.msk.bf16.gmra.mxu2 %vm419_vm1, %v1747_v6  ;;  %1663 = vmatmul.msk.bf16.gmra.mxu0 %vm419_vm1, %v1740_v7 }
  0x47   : > { %1671 = vmatmul.msk.bf16.gmra.mxu2 %vm419_vm1, %v1748_v8  ;;  %1664 = vmatmul.msk.bf16.gmra.mxu0 %vm419_vm1, %v1741_v9 }
  0x57   : > { %1672 = vmatmul.msk.bf16.gmra.mxu2 %vm419_vm1, %v1749_v10  ;;  %1665 = vmatmul.msk.bf16.gmra.mxu0 %vm419_vm1, %v1742_v11 }
  0x67   : > { %1673 = vmatmul.msk.bf16.gmra.mxu2 %vm419_vm1, %v1750_v12  ;;  %1666 = vmatmul.msk.bf16.gmra.mxu0 %vm419_vm1, %v1743_v13 }
  0x77   : > { %1674 = vmatmul.msk.bf16.gmra.mxu2 %vm419_vm1, %v1751_v14  ;;  %1667 = vmatmul.msk.bf16.gmra.mxu0 %vm419_vm1, %v1744_v15 }
  0x87   : > { %1675 = vmatmul.msk.bf16.gmra.mxu2 %vm419_vm1, %v1752_v16 }
  0x94   : > { %v478_v18 = vpop.f32.mrf.mxu0 }
  0x95   : > { %v479_v19 = vadd.f32 %v2064_v17, %v478_v18 }
  0x97   : > { %v553_v20 = vmul.f32 0.5, %v479_v19 }
  0x99   : > { %1835 = vtanh.f32 %v553_v20 }
  0x9a   : > { %v513_v21 = vpop.f32.mrf.mxu2 }
  0x9b   : > { %v514_v22 = vadd.f32 %v2064_v17, %v513_v21 }
  0x9c   : > { %v480_v23 = vpop.f32.mrf.mxu0 }
  0x9d   : > { %v567_v24 = vmul.f32 0.5, %v514_v22  ;;  %v481_v25 = vadd.f32 %v2064_v17, %v480_v23 }
  0x9f   : > { %v1836_v26 = vpop.eup %1835  ;;  %1837 = vtanh.f32 %v567_v24  ;;  %v554_v27 = vmul.f32 0.5, %v481_v25 }
  0xa0   : > { %v613_v28 = vmul.f32 0.5, %v1836_v26 }
  0xa1   : > { %1839 = vtanh.f32 %v554_v27 }
  0xa2   : > { %v643_v29 = vadd.f32 0.5, %v613_v28  ;;  %v515_v30 = vpop.f32.mrf.mxu2 }
  0xa3   : > { %v516_v31 = vadd.f32 %v2064_v17, %v515_v30 }
  0xa4   : > { %v673_v32 = vmul.f32 %v643_v29, %v479_v19  ;;  %v483_v33 = vpop.f32.mrf.mxu0 }
  0xa5   : > { %v1838_v34 = vpop.eup %1837  ;;  %v568_v35 = vmul.f32 0.5, %v516_v31  ;;  %v484_v36 = vadd.f32 %v2064_v17, %v483_v33 }
  0xa6   : > { %703 = vst [vmem:[#allocation2] sm:$0xff] %v673_v32  ;;  %v627_v37 = vmul.f32 0.5, %v1838_v34 }
  0xa7   : > { %v1840_v38 = vpop.eup %1839  ;;  %733 = vst [vmem:[#allocation2] sm:$0x1] %v1937_v39  ;;  %1841 = vtanh.f32 %v568_v35  ;;  %v555_v40 = vmul.f32 0.5, %v484_v36 }
  0xa8   : > { %v657_v41 = vadd.f32 0.5, %v627_v37  ;;  %v614_v42 = vmul.f32 0.5, %v1840_v38 }
  0xa9   : > { %1843 = vtanh.f32 %v555_v40 }
  0xaa   : > { %v687_v43 = vmul.f32 %v657_v41, %v514_v22  ;;  %v644_v44 = vadd.f32 0.5, %v614_v42  ;;  %v518_v45 = vpop.f32.mrf.mxu2 }
  0xab   : > { %v519_v46 = vadd.f32 %v2064_v17, %v518_v45 }
  0xac   : > { %717 = vst [vmem:[#allocation2 + $0x70] sm:$0xff] %v687_v43  ;;  %v674_v47 = vmul.f32 %v644_v44, %v481_v25  ;;  %v485_v48 = vpop.f32.mrf.mxu0 }
  0xad   : > { %v1842_v49 = vpop.eup %1841  ;;  %747 = vst [vmem:[#allocation2 + $0x71] sm:$0x1] %v1937_v39  ;;  %v569_v50 = vmul.f32 0.5, %v519_v46  ;;  %v486_v51 = vadd.f32 %v2064_v17, %v485_v48 }
  0xae   : > { %704 = vst [vmem:[#allocation2 + $0x8] sm:$0xff] %v674_v47  ;;  %v628_v52 = vmul.f32 0.5, %v1842_v49 }
  0xaf   : > { %v1844_v53 = vpop.eup %1843  ;;  %1845 = vtanh.f32 %v569_v50  ;;  %v556_v54 = vmul.f32 0.5, %v486_v51 }
  0xb0   : > { %v658_v55 = vadd.f32 0.5, %v628_v52  ;;  %v615_v56 = vmul.f32 0.5, %v1844_v53 }
  0xb1   : > { %1847 = vtanh.f32 %v556_v54 }
  0xb2   : > { %v688_v57 = vmul.f32 %v658_v55, %v516_v31  ;;  %v645_v58 = vadd.f32 0.5, %v615_v56  ;;  %v520_v59 = vpop.f32.mrf.mxu2 }
  0xb3   : > { %v521_v60 = vadd.f32 %v2064_v17, %v520_v59 }
  0xb4   : > { %718 = vst [vmem:[#allocation2 + $0x78] sm:$0xff] %v688_v57  ;;  %v675_v61 = vmul.f32 %v645_v58, %v484_v36  ;;  %v488_v62 = vpop.f32.mrf.mxu0 }
  0xb5   : > { %v1846_v63 = vpop.eup %1845  ;;  %738 = vst [vmem:[#allocation2 + $0x78] sm:$0x1] %v1937_v39  ;;  %v570_v0 = vmul.f32 0.5, %v521_v60  ;;  %v489_v1 = vadd.f32 %v2064_v17, %v488_v62 }
  0xb6   : > { %705 = vst [vmem:[#allocation2 + $0x10] sm:$0xff] %v675_v61  ;;  %v629_v2 = vmul.f32 0.5, %v1846_v63 }
  0xb7   : > { %v1848_v3 = vpop.eup %1847  ;;  %743 = vst [vmem:[#allocation2 + $0x11] sm:$0x1] %v1937_v39  ;;  %1849 = vtanh.f32 %v570_v0  ;;  %v557_v4 = vmul.f32 0.5, %v489_v1 }
  0xb8   : > { %v659_v5 = vadd.f32 0.5, %v629_v2  ;;  %v616_v6 = vmul.f32 0.5, %v1848_v3 }
  0xb9   : > { %1851 = vtanh.f32 %v557_v4 }
  0xba   : > { %v689_v7 = vmul.f32 %v659_v5, %v519_v46  ;;  %v646_v8 = vadd.f32 0.5, %v616_v6  ;;  %v523_v9 = vpop.f32.mrf.mxu2 }
  0xbb   : > { %v524_v10 = vadd.f32 %v2064_v17, %v523_v9 }
  0xbc   : > { %719 = vst [vmem:[#allocation2 + $0x80] sm:$0xff] %v689_v7  ;;  %v676_v11 = vmul.f32 %v646_v8, %v486_v51  ;;  %v490_v12 = vpop.f32.mrf.mxu0 }
  0xbd   : > { %v1850_v13 = vpop.eup %1849  ;;  %v571_v14 = vmul.f32 0.5, %v524_v10  ;;  %v491_v15 = vadd.f32 %v2064_v17, %v490_v12 }
  0xbe   : > { %706 = vst [vmem:[#allocation2 + $0x18] sm:$0xff] %v676_v11  ;;  %v630_v16 = vmul.f32 0.5, %v1850_v13 }
  0xbf   : > { %v1852_v18 = vpop.eup %1851  ;;  %734 = vst [vmem:[#allocation2 + $0x18] sm:$0x1] %v1937_v39  ;;  %1853 = vtanh.f32 %v571_v14  ;;  %v558_v19 = vmul.f32 0.5, %v491_v15 }
  0xc0   : > { %v660_v20 = vadd.f32 0.5, %v630_v16  ;;  %v617_v21 = vmul.f32 0.5, %v1852_v18 }
  0xc1   : > { %1855 = vtanh.f32 %v558_v19 }
  0xc2   : > { %v690_v22 = vmul.f32 %v660_v20, %v521_v60  ;;  %v647_v23 = vadd.f32 0.5, %v617_v21  ;;  %v525_v24 = vpop.f32.mrf.mxu2 }
  0xc3   : > { %v526_v25 = vadd.f32 %v2064_v17, %v525_v24 }
  0xc4   : > { %720 = vst [vmem:[#allocation2 + $0x88] sm:$0xff] %v690_v22  ;;  %v677_v26 = vmul.f32 %v647_v23, %v489_v1  ;;  %v493_v27 = vpop.f32.mrf.mxu0 }
  0xc5   : > { %v1854_v28 = vpop.eup %1853  ;;  %748 = vst [vmem:[#allocation2 + $0x89] sm:$0x1] %v1937_v39  ;;  %v572_v29 = vmul.f32 0.5, %v526_v25  ;;  %v494_v30 = vadd.f32 %v2064_v17, %v493_v27 }
  0xc6   : > { %707 = vst [vmem:[#allocation2 + $0x20] sm:$0xff] %v677_v26  ;;  %v631_v31 = vmul.f32 0.5, %v1854_v28 }
  0xc7   : > { %v1856_v32 = vpop.eup %1855  ;;  %1857 = vtanh.f32 %v572_v29  ;;  %v559_v33 = vmul.f32 0.5, %v494_v30 }
  0xc8   : > { %v661_v34 = vadd.f32 0.5, %v631_v31  ;;  %v618_v35 = vmul.f32 0.5, %v1856_v32 }
  0xc9   : > { %1859 = vtanh.f32 %v559_v33 }
  0xca   : > { %v691_v36 = vmul.f32 %v661_v34, %v524_v10  ;;  %v648_v37 = vadd.f32 0.5, %v618_v35  ;;  %v528_v38 = vpop.f32.mrf.mxu2 }
  0xcb   : > { %v529_v40 = vadd.f32 %v2064_v17, %v528_v38 }
  0xcc   : > { %721 = vst [vmem:[#allocation2 + $0x90] sm:$0xff] %v691_v36  ;;  %v678_v41 = vmul.f32 %v648_v37, %v491_v15  ;;  %v495_v42 = vpop.f32.mrf.mxu0 }
  0xcd   : > { %v1858_v43 = vpop.eup %1857  ;;  %739 = vst [vmem:[#allocation2 + $0x90] sm:$0x1] %v1937_v39  ;;  %v573_v44 = vmul.f32 0.5, %v529_v40  ;;  %v496_v45 = vadd.f32 %v2064_v17, %v495_v42 }
  0xce   : > { %708 = vst [vmem:[#allocation2 + $0x28] sm:$0xff] %v678_v41  ;;  %v632_v46 = vmul.f32 0.5, %v1858_v43 }
  0xcf   : > { %v1860_v47 = vpop.eup %1859  ;;  %744 = vst [vmem:[#allocation2 + $0x29] sm:$0x1] %v1937_v39  ;;  %1861 = vtanh.f32 %v573_v44  ;;  %v560_v48 = vmul.f32 0.5, %v496_v45 }
  0xd0   : > { %v662_v49 = vadd.f32 0.5, %v632_v46  ;;  %v619_v50 = vmul.f32 0.5, %v1860_v47 }
  0xd1   : > { %1863 = vtanh.f32 %v560_v48 }
  0xd2   : > { %v692_v51 = vmul.f32 %v662_v49, %v526_v25  ;;  %v649_v52 = vadd.f32 0.5, %v619_v50  ;;  %v530_v53 = vpop.f32.mrf.mxu2 }
  0xd3   : > { %v531_v54 = vadd.f32 %v2064_v17, %v530_v53 }
  0xd4   : > { %722 = vst [vmem:[#allocation2 + $0x98] sm:$0xff] %v692_v51  ;;  %v679_v55 = vmul.f32 %v649_v52, %v494_v30  ;;  %v498_v56 = vpop.f32.mrf.mxu0 }
  0xd5   : > { %v1862_v57 = vpop.eup %1861  ;;  %v574_v58 = vmul.f32 0.5, %v531_v54  ;;  %v499_v59 = vadd.f32 %v2064_v17, %v498_v56 }
  0xd6   : > { %709 = vst [vmem:[#allocation2 + $0x30] sm:$0xff] %v679_v55  ;;  %v633_v60 = vmul.f32 0.5, %v1862_v57 }
  0xd7   : > { %v1864_v61 = vpop.eup %1863  ;;  %735 = vst [vmem:[#allocation2 + $0x30] sm:$0x1] %v1937_v39  ;;  %1865 = vtanh.f32 %v574_v58  ;;  %v561_v62 = vmul.f32 0.5, %v499_v59 }
  0xd8   : > { %v663_v63 = vadd.f32 0.5, %v633_v60  ;;  %v620_v0 = vmul.f32 0.5, %v1864_v61 }
  0xd9   : > { %1867 = vtanh.f32 %v561_v62 }
  0xda   : > { %v693_v1 = vmul.f32 %v663_v63, %v529_v40  ;;  %v650_v2 = vadd.f32 0.5, %v620_v0  ;;  %v533_v3 = vpop.f32.mrf.mxu2 }
  0xdb   : > { %v534_v4 = vadd.f32 %v2064_v17, %v533_v3 }
  0xdc   : > { %723 = vst [vmem:[#allocation2 + $0xa0] sm:$0xff] %v693_v1  ;;  %v680_v5 = vmul.f32 %v650_v2, %v496_v45  ;;  %v500_v6 = vpop.f32.mrf.mxu0 }
  0xdd   : > { %v1866_v7 = vpop.eup %1865  ;;  %749 = vst [vmem:[#allocation2 + $0xa1] sm:$0x1] %v1937_v39  ;;  %v575_v8 = vmul.f32 0.5, %v534_v4  ;;  %v501_v9 = vadd.f32 %v2064_v17, %v500_v6 }
  0xde   : > { %710 = vst [vmem:[#allocation2 + $0x38] sm:$0xff] %v680_v5  ;;  %v634_v10 = vmul.f32 0.5, %v1866_v7 }
  0xdf   : > { %v1868_v11 = vpop.eup %1867  ;;  %1869 = vtanh.f32 %v575_v8  ;;  %v562_v12 = vmul.f32 0.5, %v501_v9 }
  0xe0   : > { %v664_v13 = vadd.f32 0.5, %v634_v10  ;;  %v621_v14 = vmul.f32 0.5, %v1868_v11 }
  0xe1   : > { %1871 = vtanh.f32 %v562_v12 }
  0xe2   : > { %v694_v15 = vmul.f32 %v664_v13, %v531_v54  ;;  %v651_v16 = vadd.f32 0.5, %v621_v14  ;;  %v535_v18 = vpop.f32.mrf.mxu2 }
  0xe3   : > { %v536_v19 = vadd.f32 %v2064_v17, %v535_v18 }
  0xe4   : > { %724 = vst [vmem:[#allocation2 + $0xa8] sm:$0xff] %v694_v15  ;;  %v681_v20 = vmul.f32 %v651_v16, %v499_v59  ;;  %v503_v21 = vpop.f32.mrf.mxu0 }
  0xe5   : > { %v1870_v22 = vpop.eup %1869  ;;  %740 = vst [vmem:[#allocation2 + $0xa8] sm:$0x1] %v1937_v39  ;;  %v576_v23 = vmul.f32 0.5, %v536_v19  ;;  %v504_v24 = vadd.f32 %v2064_v17, %v503_v21 }
  0xe6   : > { %711 = vst [vmem:[#allocation2 + $0x40] sm:$0xff] %v681_v20  ;;  %v635_v25 = vmul.f32 0.5, %v1870_v22 }
  0xe7   : > { %v1872_v26 = vpop.eup %1871  ;;  %745 = vst [vmem:[#allocation2 + $0x41] sm:$0x1] %v1937_v39  ;;  %1873 = vtanh.f32 %v576_v23  ;;  %v563_v27 = vmul.f32 0.5, %v504_v24 }
  0xe8   : > { %v665_v28 = vadd.f32 0.5, %v635_v25  ;;  %v622_v29 = vmul.f32 0.5, %v1872_v26 }
  0xe9   : > { %1875 = vtanh.f32 %v563_v27 }
  0xea   : > { %v695_v30 = vmul.f32 %v665_v28, %v534_v4  ;;  %v652_v31 = vadd.f32 0.5, %v622_v29  ;;  %v538_v32 = vpop.f32.mrf.mxu2 }
  0xeb   : > { %v539_v33 = vadd.f32 %v2064_v17, %v538_v32 }
  0xec   : > { %725 = vst [vmem:[#allocation2 + $0xb0] sm:$0xff] %v695_v30  ;;  %v682_v34 = vmul.f32 %v652_v31, %v501_v9  ;;  %v505_v35 = vpop.f32.mrf.mxu0 }
  0xed   : > { %v1874_v36 = vpop.eup %1873  ;;  %v577_v37 = vmul.f32 0.5, %v539_v33  ;;  %v506_v38 = vadd.f32 %v2064_v17, %v505_v35 }
  0xee   : > { %712 = vst [vmem:[#allocation2 + $0x48] sm:$0xff] %v682_v34  ;;  %v636_v40 = vmul.f32 0.5, %v1874_v36 }
  0xef   : > { %v1876_v41 = vpop.eup %1875  ;;  %736 = vst [vmem:[#allocation2 + $0x48] sm:$0x1] %v1937_v39  ;;  %1877 = vtanh.f32 %v577_v37  ;;  %v564_v42 = vmul.f32 0.5, %v506_v38 }
  0xf0   : > { %v666_v43 = vadd.f32 0.5, %v636_v40  ;;  %v623_v44 = vmul.f32 0.5, %v1876_v41 }
  0xf1   : > { %1879 = vtanh.f32 %v564_v42 }
  0xf2   : > { %v696_v45 = vmul.f32 %v666_v43, %v536_v19  ;;  %v653_v46 = vadd.f32 0.5, %v623_v44  ;;  %v540_v47 = vpop.f32.mrf.mxu2 }
  0xf3   : > { %v541_v48 = vadd.f32 %v2064_v17, %v540_v47 }
  0xf4   : > { %726 = vst [vmem:[#allocation2 + $0xb8] sm:$0xff] %v696_v45  ;;  %v683_v49 = vmul.f32 %v653_v46, %v504_v24  ;;  %v508_v50 = vpop.f32.mrf.mxu0 }
  0xf5   : > { %v1878_v51 = vpop.eup %1877  ;;  %750 = vst [vmem:[#allocation2 + $0xb9] sm:$0x1] %v1937_v39  ;;  %v578_v52 = vmul.f32 0.5, %v541_v48  ;;  %v509_v53 = vadd.f32 %v2064_v17, %v508_v50 }
  0xf6   : > { %713 = vst [vmem:[#allocation2 + $0x50] sm:$0xff] %v683_v49  ;;  %v637_v54 = vmul.f32 0.5, %v1878_v51 }
  0xf7   : > { %v1880_v55 = vpop.eup %1879  ;;  %1881 = vtanh.f32 %v578_v52  ;;  %v565_v56 = vmul.f32 0.5, %v509_v53 }
  0xf8   : > { %v667_v57 = vadd.f32 0.5, %v637_v54  ;;  %v624_v58 = vmul.f32 0.5, %v1880_v55 }
  0xf9   : > { %1883 = vtanh.f32 %v565_v56 }
  0xfa   : > { %v697_v59 = vmul.f32 %v667_v57, %v539_v33  ;;  %v654_v60 = vadd.f32 0.5, %v624_v58  ;;  %v543_v61 = vpop.f32.mrf.mxu2 }
  0xfb   : > { %v544_v62 = vadd.f32 %v2064_v17, %v543_v61 }
  0xfc   : > { %727 = vst [vmem:[#allocation2 + $0xc0] sm:$0xff] %v697_v59  ;;  %v684_v63 = vmul.f32 %v654_v60, %v506_v38  ;;  %v510_v0 = vpop.f32.mrf.mxu0 }
  0xfd   : > { %v1882_v1 = vpop.eup %1881  ;;  %741 = vst [vmem:[#allocation2 + $0xc0] sm:$0x1] %v1937_v39  ;;  %v579_v2 = vmul.f32 0.5, %v544_v62  ;;  %v511_v3 = vadd.f32 %v2064_v17, %v510_v0 }
  0xfe   : > { %714 = vst [vmem:[#allocation2 + $0x58] sm:$0xff] %v684_v63  ;;  %v638_v4 = vmul.f32 0.5, %v1882_v1 }
  0xff   : > { %v1884_v5 = vpop.eup %1883  ;;  %746 = vst [vmem:[#allocation2 + $0x59] sm:$0x1] %v1937_v39  ;;  %1885 = vtanh.f32 %v579_v2  ;;  %v566_v6 = vmul.f32 0.5, %v511_v3 }
 0x100   : > { %v668_v7 = vadd.f32 0.5, %v638_v4  ;;  %v625_v8 = vmul.f32 0.5, %v1884_v5 }
 0x101   : > { %1887 = vtanh.f32 %v566_v6 }
 0x102   : > { %v698_v9 = vmul.f32 %v668_v7, %v541_v48  ;;  %v655_v10 = vadd.f32 0.5, %v625_v8  ;;  %v545_v11 = vpop.f32.mrf.mxu2 }
 0x103   : > { %v546_v12 = vadd.f32 %v2064_v17, %v545_v11 }
 0x104   : > { %728 = vst [vmem:[#allocation2 + $0xc8] sm:$0xff] %v698_v9  ;;  %v685_v13 = vmul.f32 %v655_v10, %v509_v53 }
 0x105   : > { %v1886_v14 = vpop.eup %1885  ;;  %v580_v15 = vmul.f32 0.5, %v546_v12 }
 0x106   : > { %715 = vst [vmem:[#allocation2 + $0x60] sm:$0xff] %v685_v13  ;;  %v639_v16 = vmul.f32 0.5, %v1886_v14 }
 0x107   : > { %v1888_v18 = vpop.eup %1887  ;;  %737 = vst [vmem:[#allocation2 + $0x60] sm:$0x1] %v1937_v39  ;;  %1889 = vtanh.f32 %v580_v15 }
 0x108   : > { %v669_v19 = vadd.f32 0.5, %v639_v16  ;;  %v626_v20 = vmul.f32 0.5, %v1888_v18 }
 0x10a   : > { %v699_v21 = vmul.f32 %v669_v19, %v544_v62  ;;  %v656_v22 = vadd.f32 0.5, %v626_v20  ;;  %v548_v23 = vpop.f32.mrf.mxu2 }
 0x10b   : > { %v549_v24 = vadd.f32 %v2064_v17, %v548_v23 }
 0x10c   : > { %729 = vst [vmem:[#allocation2 + $0xd0] sm:$0xff] %v699_v21  ;;  %v686_v25 = vmul.f32 %v656_v22, %v511_v3 }
 0x10d   : > { %v1890_v26 = vpop.eup %1889  ;;  %751 = vst [vmem:[#allocation2 + $0xd1] sm:$0x1] %v1937_v39  ;;  %v581_v27 = vmul.f32 0.5, %v549_v24 }
 0x10e   : > { %716 = vst [vmem:[#allocation2 + $0x68] sm:$0xff] %v686_v25  ;;  %v640_v28 = vmul.f32 0.5, %v1890_v26 }
 0x10f   : > { %1891 = vtanh.f32 %v581_v27 }
 0x110   : > { %v670_v29 = vadd.f32 0.5, %v640_v28 }
 0x112   : > { %v700_v30 = vmul.f32 %v670_v29, %v546_v12  ;;  %v550_v31 = vpop.f32.mrf.mxu2 }
 0x113   : > { %v551_v32 = vadd.f32 %v2064_v17, %v550_v31 }
 0x114   : > { %730 = vst [vmem:[#allocation2 + $0xd8] sm:$0xff] %v700_v30 }
 0x115   : > { %v1892_v33 = vpop.eup %1891  ;;  %742 = vst [vmem:[#allocation2 + $0xd8] sm:$0x1] %v1937_v39  ;;  %v582_v34 = vmul.f32 0.5, %v551_v32 }
 0x116   : > { %v641_v35 = vmul.f32 0.5, %v1892_v33 }
 0x117   : > { %1893 = vtanh.f32 %v582_v34 }
 0x118   : > { %v671_v36 = vadd.f32 0.5, %v641_v35 }
 0x11a   : > { %v701_v37 = vmul.f32 %v671_v36, %v549_v24 }
 0x11c   : > { %731 = vst [vmem:[#allocation2 + $0xe0] sm:$0xff] %v701_v37 }
 0x11d   : > { %v1894_v38 = vpop.eup %1893 }
 0x11e   : > { %v642_v40 = vmul.f32 0.5, %v1894_v38 }
 0x120   : > { %v672_v41 = vadd.f32 0.5, %v642_v40 }
 0x121   : > { %756 = sbr.rel (%p1676_p7) target bundleno = 298 (0x12a), region = 52 }
 0x122   : > { %v702_v42 = vmul.f32 %v672_v41, %v551_v32 }
 0x124   : > { %732 = vst [vmem:[#allocation2 + $0xe8] sm:$0xff] %v702_v42 }
 0x125   : > { %752 = vst [vmem:[#allocation2 + $0xe9] sm:$0x1] %v1937_v39 }
 0x126   : > { %v1938_v17 = vmov 0.0  }
 0x127   : > { %757 = vst [vmem:[#allocation2] sm:$0xff] %v1938_v17 }
 0x128   : > { %758 = vst [vmem:[#allocation2 + $0x8] sm:$0xff] %v1938_v17 }
 0x129   : > { %759 = vst [vmem:[#allocation2 + $0x10] sm:$0xff] %v1938_v17 }
 0x12a PF: > { %s760_s11 = ssub.s32 17, %s2016_s10 }
 0x12b   : > { %p761_p8 = scmp.ge.s32.totalorder %s760_s11, 0  ;;  %p762_p9 = scmp.lt.s32.totalorder %s760_s11, 10 }
 0x12d   : > { %p763_p10 = pnand %p762_p9, %p761_p8 }
 0x12e   : > { %s767_s12 = smul.u32 (!%p763_p10), 24, %s760_s11 }
 0x12f   : > { %766 = sbr.rel (%p763_p10) target bundleno = 312 (0x138), region = 56 }
 0x130   : > { %s768_s13 = scalar_lea.vmem (!%p763_p10), [#allocation2], %s767_s12 }
 0x134   : > { %v1939_v43 = vmov 0.0  }
 0x135   : > { %769 = vst [vmem:[%s768_s13] sm:$0xff] %v1939_v43 }
 0x136   : > { %770 = vst [vmem:[%s768_s13 + $0x8] sm:$0xff] %v1939_v43 }
 0x137   : > { %771 = vst [vmem:[%s768_s13 + $0x10] sm:$0xff] %v1939_v43 }
 0x138 PF: > { %v1760_v39 = vld [vmem:[%s2668_s5 + $0x38] sm:$0xff]  ;;  %v1759_v44 = vld [vmem:[%s2668_s5 + $0x30] sm:$0xff]  ;;  %v772_v45 = vld [vmem:[%s2666_s3] sm:$0x7]  ;;  %vm1401_vm2 = vcmask 1046528  }
 0x139   : > { %1260 = vmatpush.bf16.msra.mxu1 %v1760_v39  ;;  %1782 = vmatpush.bf16.msra.mxu3 %v1760_v39  ;;  %v773_v46 = vld [vmem:[%s2666_s3 + $0x4] sm:$0x7]  ;;  %v2130_v48 = vperm.slane %v772_v45, 0  ;;  %v1758_v49 = vld [vmem:[%s2668_s5 + $0x28] sm:$0xff]  ;;  %v2135_v53 = vperm.slane %v772_v45, 1  ;;  %v2137_v54 = vperm.slane %v772_v45, 2 }
 0x13a   : > { %v2139_v55 = vperm.slane %v773_v46, 0  ;;  %v2158_v5 = vperm.slane %v773_v46, 1  ;;  %v1757_v26 = vld [vmem:[%s2668_s5 + $0x20] sm:$0xff]  ;;  %v2188_v31 = vperm.slane %v773_v46, 2  ;;  %v774_v32 = vld [vmem:[%s2666_s3 + $0x8] sm:$0x7] }
 0x13d   : > { %1261 = vmatpush.bf16.msra.mxu1 %v1759_v44  ;;  %1783 = vmatpush.bf16.msra.mxu3 %v1759_v44  ;;  %v1756_v44 = vld [vmem:[%s2668_s5 + $0x18] sm:$0xff] }
 0x13e   : > { %v775_v47 = vld [vmem:[#allocation2] sm:$0xff]  ;;  %v776_v50 = vld [vmem:[#allocation2 + $0x8] sm:$0xff]  ;;  %v777_v51 = vld [vmem:[#allocation2 + $0x18] sm:$0xff] }
 0x13f   : > { %v778_v52 = vld [vmem:[#allocation2 + $0x20] sm:$0xff]  ;;  %v2141_v56 = vld [vmem:[#allocation2 + $0x30] sm:$0xff]  ;;  %v2143_v57 = vld [vmem:[#allocation2 + $0x38] sm:$0xff]  ;;  %v836_v59 = vmul.f32 %v2130_v48, %v775_v47  ;;  %v837_v60 = vmul.f32 %v2130_v48, %v776_v50  ;;  %v2148_v61 = vmul.f32 %v2130_v48, %v777_v51  ;;  %v935_v12 = vmul.f32 %v2139_v55, %v777_v51 }
 0x140   : > { %v795_v58 = vld [vmem:[#allocation2 + $0x1] sm:$0xff]  ;;  %v2151_v62 = vmul.f32 %v2130_v48, %v778_v52  ;;  %v796_v63 = vld [vmem:[#allocation2 + $0x9] sm:$0xff]  ;;  %v797_v0 = vld [vmem:[#allocation2 + $0x19] sm:$0xff]  ;;  %v840_v2 = vmul.f32 %v2130_v48, %v2141_v56  ;;  %v841_v3 = vmul.f32 %v2130_v48, %v2143_v57  ;;  %v936_v36 = vmul.f32 %v2139_v55, %v778_v52 }
 0x141   : > { %v798_v1 = vld [vmem:[#allocation2 + $0x21] sm:$0xff]  ;;  %v869_v4 = vmul.f32 %v2135_v53, %v795_v58  ;;  %v2160_v6 = vld [vmem:[#allocation2 + $0x31] sm:$0xff]  ;;  %v2162_v7 = vld [vmem:[#allocation2 + $0x39] sm:$0xff]  ;;  %v870_v9 = vmul.f32 %v2135_v53, %v796_v63  ;;  %v2166_v10 = vmul.f32 %v2135_v53, %v797_v0  ;;  %1262 = vmatpush.bf16.msra.mxu1 %v1758_v49  ;;  %1784 = vmatpush.bf16.msra.mxu3 %v1758_v49  ;;  %v2221_v49 = vperm.slane %v774_v32, 0 }
 0x142   : > { %v815_v8 = vld [vmem:[#allocation2 + $0x2] sm:$0xff]  ;;  %v2169_v11 = vmul.f32 %v2135_v53, %v798_v1  ;;  %v816_v13 = vld [vmem:[#allocation2 + $0xa] sm:$0xff]  ;;  %v817_v14 = vld [vmem:[#allocation2 + $0x1a] sm:$0xff]  ;;  %v873_v16 = vmul.f32 %v2135_v53, %v2160_v6  ;;  %v874_v18 = vmul.f32 %v2135_v53, %v2162_v7  ;;  %v2199_v38 = vmul.f32 %v2139_v55, %v2141_v56 }
 0x143   : > { %v818_v15 = vld [vmem:[#allocation2 + $0x22] sm:$0xff]  ;;  %v885_v19 = vadd.f32 %v869_v4, %v836_v59  ;;  %v902_v20 = vmul.f32 %v2137_v54, %v815_v8  ;;  %v819_v21 = vld [vmem:[#allocation2 + $0x32] sm:$0xff]  ;;  %v886_v22 = vadd.f32 %v870_v9, %v837_v60  ;;  %v903_v23 = vmul.f32 %v2137_v54, %v816_v13  ;;  %v820_v27 = vld [vmem:[#allocation2 + $0x3a] sm:$0xff] }
 0x144   : > { %v2179_v24 = vmul.f32 %v2137_v54, %v817_v14  ;;  %v2182_v25 = vmul.f32 %v2137_v54, %v818_v15  ;;  %v889_v28 = vadd.f32 %v873_v16, %v840_v2  ;;  %v890_v29 = vadd.f32 %v874_v18, %v841_v3  ;;  %v782_v8 = vld [vmem:[#allocation2 + $0x50] sm:$0xff] }
 0x145   : > { %v906_v30 = vmul.f32 %v2137_v54, %v819_v21  ;;  %v907_v33 = vmul.f32 %v2137_v54, %v820_v27  ;;  %v918_v34 = vadd.f32 %v902_v20, %v885_v19  ;;  %v919_v35 = vadd.f32 %v903_v23, %v886_v22  ;;  %1263 = vmatpush.bf16.msra.mxu1 %v1757_v26  ;;  %v801_v19 = vld [vmem:[#allocation2 + $0x49] sm:$0xff]  ;;  %v802_v20 = vld [vmem:[#allocation2 + $0x51] sm:$0xff] }
 0x146   : > { %v2203_v40 = vmul.f32 %v2139_v55, %v2143_v57  ;;  %v968_v41 = vmul.f32 %v2158_v5, %v797_v0  ;;  %v969_v39 = vmul.f32 %v2158_v5, %v798_v1  ;;  %1785 = vmatpush.bf16.msra.mxu3 %v1757_v26  ;;  %v2214_v45 = vmul.f32 %v2158_v5, %v2160_v6  ;;  %v781_v1 = vld [vmem:[#allocation2 + $0x48] sm:$0xff]  ;;  %v822_v23 = vld [vmem:[#allocation2 + $0x52] sm:$0xff] }
 0x147   : > { %v2195_v37 = vadd.f32 %v906_v30, %v889_v28  ;;  %v2206_v42 = vadd.f32 %v907_v33, %v890_v29  ;;  %v951_v17 = vadd.f32 %v935_v12, %v918_v34  ;;  %v952_v43 = vadd.f32 %v936_v36, %v919_v35  ;;  %v1755_v12 = vld [vmem:[%s2668_s5 + $0x10] sm:$0xff]  ;;  %v1754_v33 = vld [vmem:[%s2668_s5 + $0x8] sm:$0xff] }
 0x148   : > { %v2218_v46 = vmul.f32 %v2158_v5, %v2162_v7  ;;  %v1001_v47 = vmul.f32 %v2188_v31, %v817_v14  ;;  %v1002_v52 = vmul.f32 %v2188_v31, %v818_v15  ;;  %v1003_v58 = vmul.f32 %v2188_v31, %v819_v21  ;;  %v821_v22 = vld [vmem:[#allocation2 + $0x4a] sm:$0xff] }
 0x149   : > { %v984_v50 = vadd.f32 %v968_v41, %v951_v17  ;;  %v985_v51 = vadd.f32 %v969_v39, %v952_v43  ;;  %v2226_v59 = vmul.f32 %v2188_v31, %v820_v27  ;;  %v1034_v60 = vmul.f32 %v2221_v49, %v2141_v56  ;;  %1264 = vmatpush.bf16.msra.mxu1 %v1756_v44 }
 0x14a   : > { %v1035_v63 = vmul.f32 %v2221_v49, %v2143_v57  ;;  %v2232_v0 = vperm.slane %v774_v32, 1  ;;  %v2234_v4 = vperm.slane %v774_v32, 2  ;;  %v842_v9 = vmul.f32 %v2130_v48, %v781_v1  ;;  %1786 = vmatpush.bf16.msra.mxu3 %v1756_v44 }
 0x14b   : > { %v1017_v2 = vadd.f32 %v1001_v47, %v984_v50  ;;  %v1018_v3 = vadd.f32 %v1002_v52, %v985_v51  ;;  %v843_v13 = vmul.f32 %v2130_v48, %v782_v8  ;;  %v875_v26 = vmul.f32 %v2135_v53, %v801_v19  ;;  %v1753_v50 = vld [vmem:[%s2668_s5] sm:$0xff] }
 0x14c   : > { %v1067_v56 = vmul.f32 %v2232_v0, %v2160_v6  ;;  %v1068_v57 = vmul.f32 %v2232_v0, %v2162_v7  ;;  %v1100_v16 = vmul.f32 %v2234_v4, %v819_v21  ;;  %v1101_v18 = vmul.f32 %v2234_v4, %v820_v27  ;;  %v2256_v21 = vld [vmem:[%s2667_s4] ss:$0 sm:$0xff] }
 0x14d   : > { %v1050_v14 = vadd.f32 %v1034_v60, %v1017_v2  ;;  %v1051_v15 = vadd.f32 %v1035_v63, %v1018_v3  ;;  %v876_v6 = vmul.f32 %v2135_v53, %v802_v20  ;;  %v887_v7 = vadd.f32 %v2166_v10, %v2148_v61  ;;  %1265 = vmatpush.bf16.msra.mxu1 %v1755_v12 }
 0x14e   : > { %v888_v28 = vadd.f32 %v2169_v11, %v2151_v62  ;;  %v908_v27 = vmul.f32 %v2137_v54, %v821_v22  ;;  %v909_v32 = vmul.f32 %v2137_v54, %v822_v23  ;;  %1787 = vmatpush.bf16.msra.mxu3 %v1755_v12  ;;  %v891_v61 = vadd.f32 %v875_v26, %v842_v9 }
 0x14f   : > { %v1083_v29 = vadd.f32 %v1067_v56, %v1050_v14  ;;  %v1084_v30 = vadd.f32 %v1068_v57, %v1051_v15  ;;  %v892_v10 = vadd.f32 %v876_v6, %v843_v13  ;;  %v920_v62 = vadd.f32 %v2179_v24, %v887_v7  ;;  %v2299_v57 = vld [vmem:[#allocation2 + $0x78] sm:$0xff]  ;;  %v2311_v6 = vld [vmem:[#allocation2 + $0xa8] sm:$0xff]  ;;  %v2313_v7 = vld [vmem:[#allocation2 + $0xb0] sm:$0xff] }
 0x150   : > { %v921_v35 = vadd.f32 %v2182_v25, %v888_v28  ;;  %v2266_v36 = vmul.f32 %v2139_v55, %v781_v1  ;;  %v2268_v41 = vadd.f32 %v908_v27, %v891_v61  ;;  %v2273_v43 = vmul.f32 %v2139_v55, %v782_v8 }
 0x151   : > { %v1116_v11 = vadd.f32 %v1100_v16, %v1083_v29  ;;  %v1117_v34 = vadd.f32 %v1101_v18, %v1084_v30  ;;  %v2270_v17 = vadd.f32 %v909_v32, %v892_v10  ;;  %v953_v39 = vadd.f32 %v2199_v38, %v920_v62  ;;  %1266 = vmatpush.bf16.msra.mxu1 %v1754_v33  ;;  %v2305_v16 = vld [vmem:[#allocation2 + $0x79] sm:$0xff]  ;;  %v2309_v18 = vld [vmem:[#allocation2 + $0x81] sm:$0xff]  ;;  %v809_v10 = vld [vmem:[#allocation2 + $0xa9] sm:$0xff] }
 0x152   : > { %v954_v47 = vadd.f32 %v2203_v40, %v921_v35  ;;  %v2280_v25 = vmul.f32 %v2158_v5, %v801_v19  ;;  %1788 = vmatpush.bf16.msra.mxu3 %v1754_v33  ;;  %v2286_v51 = vmul.f32 %v2158_v5, %v802_v20  ;;  %v2290_v52 = vmul.f32 %v2188_v31, %v821_v22  ;;  %v2325_v30 = vld [vmem:[#allocation2 + $0x82] sm:$0xff]  ;;  %v810_v62 = vld [vmem:[#allocation2 + $0xb1] sm:$0xff] }
 0x153   : > { %v1136_v44 = vadd.f32 %v2256_v21, %v1116_v11  ;;  %v1137_v24 = vadd.f32 %v2256_v21, %v1117_v34  ;;  %v986_v38 = vadd.f32 %v2214_v45, %v953_v39  ;;  %v2294_v2 = vmul.f32 %v2188_v31, %v822_v23  ;;  %v2301_v45 = vld [vmem:[#allocation2 + $0x80] sm:$0xff]  ;;  %2681 = vst [vmem:[#allocation3_spill] sm:$0xff] %v2309_v18 }
 0x154   : > { %v987_v40 = vadd.f32 %v2218_v46, %v954_v47  ;;  %v1036_v9 = vmul.f32 %v2221_v49, %v781_v1  ;;  %v1037_v12 = vmul.f32 %v2221_v49, %v782_v8  ;;  %v1069_v56 = vmul.f32 %v2232_v0, %v801_v19  ;;  %2685 = vst [vmem:[#allocation7_spill] sm:$0xff] %v2325_v30 }
 0x155   : > { %v1152_v60 = vmax.f32 %v1136_v44, 0.0  ;;  %v1153_v63 = vmax.f32 %v1137_v24, 0.0  ;;  %v1019_v3 = vadd.f32 %v1003_v58, %v986_v38  ;;  %v1070_v46 = vmul.f32 %v2232_v0, %v802_v20  ;;  %1267 = vmatpush.bf16.msra.mxu1 %v1753_v50  ;;  %v2345_v38 = vld [vmem:[#allocation2 + $0x90] sm:$0xff] }
 0x156   : > { %v1020_v15 = vadd.f32 %v2226_v59, %v987_v40  ;;  %1789 = vmatpush.bf16.msra.mxu3 %v1753_v50  ;;  %v1102_v1 = vmul.f32 %v2234_v4, %v821_v22  ;;  %v1103_v8 = vmul.f32 %v2234_v4, %v822_v23  ;;  %v2315_v59 = vld [vmem:[#allocation2 + $0x91] sm:$0xff]  ;;  %v846_v20 = vmul.f32 %v2130_v48, %v2299_v57  ;;  %v2321_v22 = vld [vmem:[#allocation2 + $0x99] sm:$0xff] }
 0x157   : > { %v1168_v13 = vmin.f32 %v1152_v60, 6.0  ;;  %v1169_v14 = vmin.f32 %v1153_v63, 6.0  ;;  %v1052_v58 = vadd.f32 %v1036_v9, %v1019_v3  ;;  %2682 = vst [vmem:[#allocation4_spill] sm:$0xff] %v2315_v59  ;;  %v847_v28 = vmul.f32 %v2130_v48, %v2301_v45  ;;  %v2323_v23 = vld [vmem:[#allocation2 + $0x7a] sm:$0xff]  ;;  %v2349_v63 = vld [vmem:[#allocation2 + $0x92] sm:$0xff] }
 0x158   : > { %v1053_v26 = vadd.f32 %v1037_v12, %v1020_v15  ;;  %2683 = vst [vmem:[#allocation5_spill] sm:$0xff] %v2321_v22  ;;  %v850_v27 = vmul.f32 %v2130_v48, %v2311_v6  ;;  %v851_v32 = vmul.f32 %v2130_v48, %v2313_v7  ;;  %v879_v33 = vmul.f32 %v2135_v53, %v2305_v16  ;;  %v2347_v60 = vld [vmem:[#allocation2 + $0x98] sm:$0xff] }
 0x159   : > { %v1184_v19 = vpack.c.bf16 %v1169_v14, %v1168_v13  ;;  %v1085_v29 = vadd.f32 %v1069_v56, %v1052_v58  ;;  %2684 = vst [vmem:[#allocation6_spill] sm:$0xff] %v2323_v23  ;;  %v880_v11 = vmul.f32 %v2135_v53, %v2309_v18  ;;  %v2337_v34 = vmul.f32 %v2135_v53, %v2315_v59  ;;  %v2356_v56 = vld [vmem:[#allocation2 + $0x9a] sm:$0xff]  ;;  %v829_v13 = vld [vmem:[#allocation2 + $0xaa] sm:$0xff]  ;;  %v830_v14 = vld [vmem:[#allocation2 + $0xb2] sm:$0xff] }
 0x15a   : > { %v1086_v61 = vadd.f32 %v1070_v46, %v1053_v26  ;;  %v2341_v35 = vmul.f32 %v2135_v53, %v2321_v22  ;;  %v883_v44 = vmul.f32 %v2135_v53, %v809_v10  ;;  %v884_v24 = vmul.f32 %v2135_v53, %v810_v62  ;;  %2686 = vst [vmem:[#allocation8_spill] sm:$0xff] %v2349_v63 }
 0x15b   : > { %1268 = vmatmul.bf16.vlgmr.msra.gmra.mxu1 %v1184_v19  ;;  %v1118_v39 = vadd.f32 %v1102_v1, %v1085_v29  ;;  %v895_v47 = vadd.f32 %v879_v33, %v846_v20  ;;  %v896_v40 = vadd.f32 %v880_v11, %v847_v28  ;;  %v912_v3 = vmul.f32 %v2137_v54, %v2323_v23 }
 0x15c   : > { %v1119_v50 = vadd.f32 %v1103_v8, %v1086_v61  ;;  %v913_v9 = vmul.f32 %v2137_v54, %v2325_v30  ;;  %2687 = vst [vmem:[#allocation9_spill] sm:$0xff] %v2356_v56  ;;  %v899_v15 = vadd.f32 %v883_v44, %v850_v27  ;;  %v900_v46 = vadd.f32 %v884_v24, %v851_v32 }
 0x15d   : > { %v1138_v12 = vadd.f32 %v2256_v21, %v1118_v39  ;;  %v2360_v58 = vmul.f32 %v2137_v54, %v2349_v63  ;;  %v2365_v8 = vmul.f32 %v2137_v54, %v2356_v56  ;;  %v916_v19 = vmul.f32 %v2137_v54, %v829_v13 }
 0x15e   : > { %v1139_v1 = vadd.f32 %v2256_v21, %v1119_v50  ;;  %v917_v26 = vmul.f32 %v2137_v54, %v830_v14  ;;  %v928_v28 = vadd.f32 %v912_v3, %v895_v47  ;;  %v929_v29 = vadd.f32 %v913_v9, %v896_v40 }
 0x15f   : > { %v1154_v20 = vmax.f32 %v1138_v12, 0.0  ;;  %v945_v27 = vmul.f32 %v2139_v55, %v2345_v38  ;;  %v2371_v33 = vadd.f32 %v916_v19, %v899_v15  ;;  %v946_v11 = vmul.f32 %v2139_v55, %v2347_v60 }
 0x160   : > { %v1155_v32 = vmax.f32 %v1139_v1, 0.0  ;;  %v2373_v61 = vadd.f32 %v917_v26, %v900_v46  ;;  %v2379_v44 = vmul.f32 %v2139_v55, %v2311_v6  ;;  %v2383_v24 = vmul.f32 %v2139_v55, %v2313_v7 }
 0x161   : > { %2688 = vst [vmem:[#allocation10_spill] sm:$0xff] %v2371_v33  ;;  %v1170_v39 = vmin.f32 %v1154_v20, 6.0  ;;  %v961_v47 = vadd.f32 %v945_v27, %v928_v28  ;;  %v962_v40 = vadd.f32 %v946_v11, %v929_v29  ;;  %v978_v3 = vmul.f32 %v2158_v5, %v2315_v59  ;;  %v823_v59 = vld [vmem:[#allocation2 + $0x62] sm:$0xff] }
 0x162   : > { %2689 = vst [vmem:[#allocation11_spill] sm:$0xff] %v2373_v61  ;;  %v1171_v50 = vmin.f32 %v1155_v32, 6.0  ;;  %v979_v9 = vmul.f32 %v2158_v5, %v2321_v22  ;;  %v2390_v12 = vmul.f32 %v2158_v5, %v809_v10  ;;  %v2393_v15 = vmul.f32 %v2158_v5, %v810_v62 }
 0x163   : > { %v1011_v46 = vmul.f32 %v2188_v31, %v2349_v63  ;;  %v1012_v1 = vmul.f32 %v2188_v31, %v2356_v56  ;;  %v994_v26 = vadd.f32 %v978_v3, %v961_v47  ;;  %v2400_v28 = vmul.f32 %v2188_v31, %v829_v13  ;;  %v803_v3 = vld [vmem:[#allocation2 + $0x61] sm:$0xff]  ;;  %v804_v56 = vld [vmem:[#allocation2 + $0x69] sm:$0xff] }
 0x164   : > { %v1185_v19 = vpack.c.bf16 %v1171_v50, %v1170_v39  ;;  %v995_v20 = vadd.f32 %v979_v9, %v962_v40  ;;  %v2403_v29 = vmul.f32 %v2188_v31, %v830_v14  ;;  %v1044_v27 = vmul.f32 %v2221_v49, %v2311_v6  ;;  %v783_v50 = vld [vmem:[#allocation2 + $0x60] sm:$0xff]  ;;  %v784_v40 = vld [vmem:[#allocation2 + $0x68] sm:$0xff] }
 0x165   : > { %v1045_v32 = vmul.f32 %v2221_v49, %v2313_v7  ;;  %v1077_v11 = vmul.f32 %v2232_v0, %v809_v10  ;;  %v1027_v63 = vadd.f32 %v1011_v46, %v994_v26  ;;  %v1078_v39 = vmul.f32 %v2232_v0, %v810_v62 }
 0x166   : > { %v1028_v22 = vadd.f32 %v1012_v1, %v995_v20  ;;  %v1110_v47 = vmul.f32 %v2234_v4, %v829_v13  ;;  %v1111_v9 = vmul.f32 %v2234_v4, %v830_v14  ;;  %v844_v6 = vmul.f32 %v2130_v48, %v783_v50  ;;  %v824_v1 = vld [vmem:[#allocation2 + $0x6a] sm:$0xff] }
 0x167   : > { %v845_v61 = vmul.f32 %v2130_v48, %v784_v40  ;;  %v877_v7 = vmul.f32 %v2135_v53, %v803_v3  ;;  %v1060_v10 = vadd.f32 %v1044_v27, %v1027_v63  ;;  %v878_v62 = vmul.f32 %v2135_v53, %v804_v56 }
 0x168   : > { %v1061_v46 = vadd.f32 %v1045_v32, %v1028_v22  ;;  %v910_v13 = vmul.f32 %v2137_v54, %v823_v59  ;;  %v911_v20 = vmul.f32 %v2137_v54, %v824_v1  ;;  %v2420_v14 = vmul.f32 %v2139_v55, %v783_v50 }
 0x169   : > { %v893_v26 = vadd.f32 %v877_v7, %v844_v6  ;;  %v2423_v33 = vmul.f32 %v2139_v55, %v784_v40  ;;  %v1093_v30 = vadd.f32 %v1077_v11, %v1060_v10  ;;  %v894_v18 = vadd.f32 %v878_v62, %v845_v61 }
 0x16a   : > { %v1094_v23 = vadd.f32 %v1078_v39, %v1061_v46  ;;  %v955_v22 = vadd.f32 %v2266_v36, %v2195_v37  ;;  %v956_v53 = vadd.f32 %v2273_v43, %v2206_v42  ;;  %v2432_v54 = vmul.f32 %v2158_v5, %v803_v3  ;;  %v791_v46 = vld [vmem:[#allocation2 + $0xc0] sm:$0xff] }
 0x16b   : > { %1273 = vmatmul.bf16.gmra.mxu1 %v1185_v19  ;;  %v2427_v63 = vadd.f32 %v910_v13, %v893_v26  ;;  %v2435_v27 = vmul.f32 %v2158_v5, %v804_v56  ;;  %v1126_v32 = vadd.f32 %v1110_v47, %v1093_v30  ;;  %v2437_v19 = vadd.f32 %v911_v20, %v894_v18  ;;  %v792_v13 = vld [vmem:[#allocation2 + $0xc8] sm:$0xff] }
 0x16c   : > { %v1127_v6 = vadd.f32 %v1111_v9, %v1094_v23  ;;  %v988_v61 = vadd.f32 %v2280_v25, %v955_v22  ;;  %v989_v11 = vadd.f32 %v2286_v51, %v956_v53  ;;  %v2442_v37 = vmul.f32 %v2188_v31, %v823_v59  ;;  %v812_v53 = vld [vmem:[#allocation2 + $0xc9] sm:$0xff] }
 0x16d   : > { %v2445_v36 = vmul.f32 %v2188_v31, %v824_v1  ;;  %v1038_v42 = vmul.f32 %v2221_v49, %v783_v50  ;;  %v1146_v43 = vadd.f32 %v2256_v21, %v1126_v32  ;;  %v1039_v18 = vmul.f32 %v2221_v49, %v784_v40 }
 0x16e   : > { %v1147_v39 = vadd.f32 %v2256_v21, %v1127_v6  ;;  %v1021_v23 = vadd.f32 %v2290_v52, %v988_v61  ;;  %v1022_v25 = vadd.f32 %v2294_v2, %v989_v11  ;;  %v1071_v51 = vmul.f32 %v2232_v0, %v803_v3 }
 0x16f   : > { %v1072_v30 = vmul.f32 %v2232_v0, %v804_v56  ;;  %v1104_v47 = vmul.f32 %v2234_v4, %v823_v59  ;;  %v1162_v9 = vmax.f32 %v1146_v43, 0.0  ;;  %v1105_v50 = vmul.f32 %v2234_v4, %v824_v1  ;;  %v811_v59 = vld [vmem:[#allocation2 + $0xc1] sm:$0xff] }
 0x170   : > { %v1163_v7 = vmax.f32 %v1147_v39, 0.0  ;;  %v1054_v10 = vadd.f32 %v1038_v42, %v1021_v23  ;;  %v1055_v62 = vadd.f32 %v1039_v18, %v1022_v25  ;;  %v848_v52 = vmul.f32 %v2130_v48, %v2345_v38  ;;  %v831_v1 = vld [vmem:[#allocation2 + $0xc2] sm:$0xff] }
 0x171   : > { %v849_v2 = vmul.f32 %v2130_v48, %v2347_v60  ;;  %v949_v40 = vmul.f32 %v2139_v55, %v791_v46  ;;  %v1178_v3 = vmin.f32 %v1162_v9, 6.0  ;;  %v950_v20 = vmul.f32 %v2139_v55, %v792_v13  ;;  %v832_v48 = vld [vmem:[#allocation2 + $0xca] sm:$0xff] }
 0x172   : > { %v1179_v56 = vmin.f32 %v1163_v7, 6.0  ;;  %v1087_v26 = vadd.f32 %v1071_v51, %v1054_v10  ;;  %v1088_v22 = vadd.f32 %v1072_v30, %v1055_v62  ;;  %v897_v32 = vadd.f32 %v2337_v34, %v848_v52 }
 0x173   : > { %v898_v6 = vadd.f32 %v2341_v35, %v849_v2  ;;  %v982_v61 = vmul.f32 %v2158_v5, %v811_v59  ;;  %v983_v43 = vmul.f32 %v2158_v5, %v812_v53  ;;  %v1015_v39 = vmul.f32 %v2188_v31, %v831_v1 }
 0x174   : > { %v1189_v11 = vpack.c.bf16 %v1179_v56, %v1178_v3  ;;  %v1120_v42 = vadd.f32 %v1104_v47, %v1087_v26  ;;  %v1121_v23 = vadd.f32 %v1105_v50, %v1088_v22  ;;  %v930_v18 = vadd.f32 %v2360_v58, %v897_v32  ;;  %v2691_v22 = vld [vmem:[#allocation6_spill] sm:$0xff] }
 0x175   : > { %v931_v25 = vadd.f32 %v2365_v8, %v898_v6  ;;  %v1016_v51 = vmul.f32 %v2188_v31, %v832_v48  ;;  %v1046_v35 = vmul.f32 %v2221_v49, %v791_v46  ;;  %v1047_v30 = vmul.f32 %v2221_v49, %v792_v13 }
 0x176   : > { %1293 = vmatmul.bf16.vlgmr.msra.gmra.mxu3 %v1189_v11  ;;  %v1140_v34 = vadd.f32 %v2256_v21, %v1120_v42  ;;  %v1079_v47 = vmul.f32 %v2232_v0, %v811_v59  ;;  %v1141_v9 = vadd.f32 %v2256_v21, %v1121_v23  ;;  %v963_v7 = vadd.f32 %v2379_v44, %v930_v18  ;;  %v2693_v23 = vld [vmem:[#allocation10_spill] sm:$0xff] }
 0x177   : > { %v964_v10 = vadd.f32 %v2383_v24, %v931_v25  ;;  %v1080_v58 = vmul.f32 %v2232_v0, %v812_v53  ;;  %v1112_v50 = vmul.f32 %v2234_v4, %v831_v1  ;;  %v1113_v62 = vmul.f32 %v2234_v4, %v832_v48  ;;  %v793_v1 = vld [vmem:[#allocation2 + $0xd8] sm:$0xff]  ;;  %v2694_v25 = vld [vmem:[#allocation11_spill] sm:$0xff] }
 0x178   : > { %v1156_v8 = vmax.f32 %v1140_v34, 0.0  ;;  %v957_v46 = vadd.f32 %v2420_v14, %v2268_v41  ;;  %v1157_v52 = vmax.f32 %v1141_v9, 0.0  ;;  %v996_v13 = vadd.f32 %v2390_v12, %v963_v7  ;;  %v813_v48 = vld [vmem:[#allocation2 + $0xd9] sm:$0xff] }
 0x179   : > { %v997_v2 = vadd.f32 %v2393_v15, %v964_v10  ;;  %v958_v44 = vadd.f32 %v2423_v33, %v2270_v17  ;;  %v1040_v56 = vmul.f32 %v2221_v49, %v2299_v57  ;;  %v1041_v26 = vmul.f32 %v2221_v49, %v2301_v45  ;;  %v2690_v33 = vld [vmem:[#allocation3_spill] sm:$0xff] }
 0x17a   : > { %v1172_v3 = vmin.f32 %v1156_v8, 6.0  ;;  %v990_v24 = vadd.f32 %v2432_v54, %v957_v46  ;;  %v1173_v59 = vmin.f32 %v1157_v52, 6.0  ;;  %v1029_v41 = vadd.f32 %v2400_v28, %v996_v13  ;;  %v814_v8 = vld [vmem:[#allocation2 + $0xe1] sm:$0xff] }
 0x17b   : > { %v1030_v14 = vadd.f32 %v2403_v29, %v997_v2  ;;  %v991_v12 = vadd.f32 %v2435_v27, %v958_v44  ;;  %v1073_v17 = vmul.f32 %v2232_v0, %v2305_v16  ;;  %v1074_v54 = vmul.f32 %v2232_v0, %v2690_v33  ;;  %v794_v29 = vld [vmem:[#allocation2 + $0xe0] sm:$0xff]  ;;  %v2692_v27 = vld [vmem:[#allocation7_spill] sm:$0xff] }
 0x17c   : > { %v1023_v15 = vadd.f32 %v2442_v37, %v990_v24  ;;  %v1106_v53 = vmul.f32 %v2234_v4, %v2691_v22  ;;  %v1186_v32 = vpack.c.bf16 %v1173_v59, %v1172_v3  ;;  %v1062_v6 = vadd.f32 %v1046_v35, %v1029_v41  ;;  %v833_v46 = vld [vmem:[#allocation2 + $0xda] sm:$0xff]  ;;  %v834_v24 = vld [vmem:[#allocation2 + $0xe2] sm:$0xff] }
 0x17d   : > { %v1063_v11 = vadd.f32 %v1047_v30, %v1030_v14  ;;  %v1024_v28 = vadd.f32 %v2445_v36, %v991_v12  ;;  %v1107_v37 = vmul.f32 %v2234_v4, %v2692_v27  ;;  %v965_v18 = vadd.f32 %v949_v40, %v2693_v23 }
 0x17e   : > { %v1056_v42 = vadd.f32 %v1040_v56, %v1023_v15  ;;  %v966_v34 = vadd.f32 %v950_v20, %v2694_v25  ;;  %1278 = vmatmul.bf16.gmra.mxu1 %v1186_v32  ;;  %v1095_v9 = vadd.f32 %v1079_v47, %v1062_v6  ;;  %v1048_v35 = vmul.f32 %v2221_v49, %v793_v1 }
 0x17f   : > { %v1096_v7 = vadd.f32 %v1080_v58, %v1063_v11  ;;  %v1057_v10 = vadd.f32 %v1041_v26, %v1024_v28  ;;  %v998_v36 = vadd.f32 %v982_v61, %v965_v18  ;;  %v1049_v13 = vmul.f32 %v2221_v49, %v794_v29 }
 0x180   : > { %v1089_v30 = vadd.f32 %v1073_v17, %v1056_v42  ;;  %v999_v52 = vadd.f32 %v983_v43, %v966_v34  ;;  %v1128_v2 = vadd.f32 %v1112_v50, %v1095_v9  ;;  %v1081_v40 = vmul.f32 %v2232_v0, %v813_v48 }
 0x181   : > { %v1129_v44 = vadd.f32 %v1113_v62, %v1096_v7  ;;  %v1090_v3 = vadd.f32 %v1074_v54, %v1057_v10  ;;  %v1031_v56 = vadd.f32 %v1015_v39, %v998_v36  ;;  %v1082_v58 = vmul.f32 %v2232_v0, %v814_v8 }
 0x182   : > { %v1122_v20 = vadd.f32 %v1106_v53, %v1089_v30  ;;  %v1032_v47 = vadd.f32 %v1016_v51, %v999_v52  ;;  %v1148_v26 = vadd.f32 %v2256_v21, %v1128_v2  ;;  %v1114_v61 = vmul.f32 %v2234_v4, %v833_v46  ;;  %v2695_v30 = vld [vmem:[#allocation4_spill] sm:$0xff]  ;;  %v2696_v46 = vld [vmem:[#allocation5_spill] sm:$0xff] }
 0x183   : > { %v1149_v59 = vadd.f32 %v2256_v21, %v1129_v44  ;;  %v1123_v41 = vadd.f32 %v1107_v37, %v1090_v3  ;;  %v1064_v50 = vadd.f32 %v1048_v35, %v1031_v56  ;;  %v1115_v14 = vmul.f32 %v2234_v4, %v834_v24  ;;  %v2697_v2 = vld [vmem:[#allocation8_spill] sm:$0xff]  ;;  %v2698_v44 = vld [vmem:[#allocation9_spill] sm:$0xff] }
 0x184   : > { %v1142_v43 = vadd.f32 %v2256_v21, %v1122_v20  ;;  %v1065_v62 = vadd.f32 %v1049_v13, %v1032_v47  ;;  %v1164_v12 = vmax.f32 %v1148_v26, 0.0  ;;  %v943_v51 = vmul.f32 %v2139_v55, %v2299_v57 }
 0x185   : > { %v1165_v15 = vmax.f32 %v1149_v59, 0.0  ;;  %v1143_v39 = vadd.f32 %v2256_v21, %v1123_v41  ;;  %v1097_v54 = vadd.f32 %v1081_v40, %v1064_v50  ;;  %v944_v1 = vmul.f32 %v2139_v55, %v2301_v45 }
 0x186   : > { %v1158_v17 = vmax.f32 %v1142_v43, 0.0  ;;  %v1098_v53 = vadd.f32 %v1082_v58, %v1065_v62  ;;  %v1180_v32 = vmin.f32 %v1164_v12, 6.0  ;;  %v959_v28 = vadd.f32 %v943_v51, %v2427_v63 }
 0x187   : > { %v1181_v6 = vmin.f32 %v1165_v15, 6.0  ;;  %v1159_v11 = vmax.f32 %v1143_v39, 0.0  ;;  %v1130_v42 = vadd.f32 %v1114_v61, %v1097_v54  ;;  %v960_v48 = vadd.f32 %v944_v1, %v2437_v19 }
 0x188   : > { %v1174_v29 = vmin.f32 %v1158_v17, 6.0  ;;  %v1131_v37 = vadd.f32 %v1115_v14, %v1098_v53  ;;  %v976_v57 = vmul.f32 %v2158_v5, %v2305_v16  ;;  %v977_v25 = vmul.f32 %v2158_v5, %v2690_v33  ;;  %v2551_v14 = vld [vmem:[%s2669_s6] ss:$0 sm:$0xff]  ;;  %v1777_v53 = vld [vmem:[%s2024_s21 + $0x18] sm:$0xff]  }
 0x189   : > { %v1190_v23 = vpack.c.bf16 %v1181_v6, %v1180_v32  ;;  %v1175_v18 = vmin.f32 %v1159_v11, 6.0  ;;  %v1150_v55 = vadd.f32 %v2256_v21, %v1130_v42  ;;  %v1009_v63 = vmul.f32 %v2188_v31, %v2691_v22 }
 0x18a   : > { %v1151_v45 = vadd.f32 %v2256_v21, %v1131_v37  ;;  %v1010_v34 = vmul.f32 %v2188_v31, %v2692_v27  ;;  %v992_v9 = vadd.f32 %v976_v57, %v959_v28  ;;  %v993_v7 = vadd.f32 %v977_v25, %v960_v48  ;;  %v1716_v48 = vld [vmem:[%s2024_s21 + $0x20] sm:$0x1] }
 0x18b   : > { %1298 = vmatmul.bf16.gmra.mxu3 %v1190_v23  ;;  %v1187_v19 = vpack.c.bf16 %v1175_v18, %v1174_v29  ;;  %v1042_v16 = vmul.f32 %v2221_v49, %v2345_v38  ;;  %v1166_v10 = vmax.f32 %v1150_v55, 0.0  ;;  %v1043_v5 = vmul.f32 %v2221_v49, %v2347_v60 }
 0x18c   : > { %v1167_v8 = vmax.f32 %v1151_v45, 0.0  ;;  %v1025_v33 = vadd.f32 %v1009_v63, %v992_v9  ;;  %v1026_v35 = vadd.f32 %v1010_v34, %v993_v7  ;;  %v1075_v22 = vmul.f32 %v2232_v0, %v2695_v30  ;;  %v1779_v63 = vld [vmem:[%s2024_s21 + $0x48] sm:$0xff]  }
 0x18d   : > { %v1076_v31 = vmul.f32 %v2232_v0, %v2696_v46  ;;  %v1182_v27 = vmin.f32 %v1166_v10, 6.0  ;;  %v1108_v38 = vmul.f32 %v2234_v4, %v2697_v2  ;;  %v1109_v49 = vmul.f32 %v2234_v4, %v2698_v44  ;;  %v1711_v4 = vld [vmem:[%s2024_s21 + $0xc] sm:$0xff]   ;;  %v1717_v10 = vld [vmem:[%s2024_s21 + $0x24] sm:$0xff]  }
 0x18e   : > { %v1183_v36 = vmin.f32 %v1167_v8, 6.0  ;;  %1283 = vmatmul.bf16.gmra.mxu1 %v1187_v19  ;;  %v1058_v52 = vadd.f32 %v1042_v16, %v1025_v33  ;;  %v1059_v13 = vadd.f32 %v1043_v5, %v1026_v35  ;;  %v1353_v61 = vunpack.c.l.bf16 %v1711_v4 }
 0x18f   : > { %v1354_v43 = vunpack.c.h.bf16 %v1711_v4  ;;  %v1763_v6 = vunpack.c.l.bf16 %v1777_v53  ;;  %v1764_v11 = vunpack.c.h.bf16 %v1777_v53  ;;  %v1358_v57 = vunpack.c.l.bf16 %v1716_v48  ;;  %v1731_v53 = vld [vmem:[%s2024_s21 + $0x5c] sm:$0x1] }
 0x190   : > { %v1191_v60 = vpack.c.bf16 %v1183_v36, %v1182_v27  ;;  %v1091_v3 = vadd.f32 %v1075_v22, %v1058_v52  ;;  %v1092_v24 = vadd.f32 %v1076_v31, %v1059_v13  ;;  %v1402_v50 = vrot.slane %v1353_v61, 1  ;;  %v1728_v22 = vld [vmem:[%s2024_s21 + $0x50] sm:$0x1]  ;;  %v1719_v13 = vld [vmem:[%s2024_s21 + $0x2c] sm:$0x1] }
 0x191   : > { %v1403_v62 = vrot.slane %v1354_v43, 1  ;;  %v1407_v42 = vrot.slane %v1763_v6, 1  ;;  %v1408_v37 = vrot.slane %v1764_v11, 1  ;;  %v1410_v45 = vrot.slane %v1358_v57, 1  ;;  %v1723_v57 = vld [vmem:[%s2024_s21 + $0x3c] sm:$0xff]  }
 0x192   : > { %v1124_v40 = vadd.f32 %v1108_v38, %v1091_v3  ;;  %v1125_v20 = vadd.f32 %v1109_v49, %v1092_v24  ;;  %v1771_v7 = vunpack.c.l.bf16 %v1779_v63  ;;  %v1772_v16 = vunpack.c.h.bf16 %v1779_v63 }
 0x193   : > { %v1404_v15 = vsel %vm1401_vm2, %v1402_v50, %v1403_v62  ;;  %v1409_v18 = vsel %vm1401_vm2, %v1407_v42, %v1408_v37  ;;  %v1411_v19 = vsel %vm1401_vm2, %v1408_v37, %v1410_v45  ;;  %v1359_v5 = vunpack.c.l.bf16 %v1717_v10 }
 0x194   : > { %v1144_v56 = vadd.f32 %v2256_v21, %v1124_v40  ;;  %v1145_v0 = vadd.f32 %v2256_v21, %v1125_v20  ;;  %v1713_v21 = vld [vmem:[%s2024_s21 + $0x14] sm:$0x1]  ;;  %v1360_v33 = vunpack.c.h.bf16 %v1717_v10  ;;  %v1427_v35 = vrot.slane %v1771_v7, 1 }
 0x195   : > { %v1355_v39 = vunpack.c.l.bf16 %v1713_v21  ;;  %v1428_v30 = vrot.slane %v1772_v16, 1  ;;  %v1412_v46 = vrot.slane %v1359_v5, 1  ;;  %v1370_v52 = vunpack.c.l.bf16 %v1728_v22 }
 0x196   : > { %v1160_v47 = vmax.f32 %v1144_v56, 0.0  ;;  %v1161_v58 = vmax.f32 %v1145_v0, 0.0  ;;  %v1413_v31 = vrot.slane %v1360_v33, 1  ;;  %v1373_v42 = vunpack.c.l.bf16 %v1731_v53 }
 0x197   : > { %v1405_v54 = vrot.slane %v1355_v39, 1  ;;  %v1429_v36 = vsel %vm1401_vm2, %v1427_v35, %v1428_v30  ;;  %v1430_v24 = vrot.slane %v1370_v52, 1 }
 0x198   : > { %v1176_v26 = vmin.f32 %v1160_v47, 6.0  ;;  %v1177_v59 = vmin.f32 %v1161_v58, 6.0  ;;  %v1414_v49 = vsel %vm1401_vm2, %v1412_v46, %v1413_v31  ;;  %v1778_v47 = vld [vmem:[%s2024_s21 + $0x30] sm:$0xff]   ;;  %v1725_v46 = vld [vmem:[%s2024_s21 + $0x44] sm:$0x1] }
 0x199   : > { %v1406_v32 = vsel %vm1401_vm2, %v1403_v62, %v1405_v54  ;;  %v1431_v0 = vsel %vm1401_vm2, %v1428_v30, %v1430_v24  ;;  %v1767_v61 = vunpack.c.l.bf16 %v1778_v47  ;;  %v1768_v43 = vunpack.c.h.bf16 %v1778_v47 }
 0x19a   : > { %v1188_v41 = vpack.c.bf16 %v1177_v59, %v1176_v26  ;;  %v1729_v26 = vld [vmem:[%s2024_s21 + $0x54] sm:$0xff]  }
 0x19b   : > { %1303 = vmatmul.bf16.gmra.mxu3 %v1191_v60  ;;  %v1361_v60 = vunpack.c.l.bf16 %v1719_v13  ;;  %v1371_v62 = vunpack.c.l.bf16 %v1729_v26  ;;  %v1372_v21 = vunpack.c.h.bf16 %v1729_v26  ;;  %v1418_v39 = vrot.slane %v1768_v43, 1 }
 0x19d   : > { %v1415_v20 = vrot.slane %v1361_v60, 1  ;;  %v1433_v54 = vrot.slane %v1372_v21, 1 }
 0x19e   : > { %1288 = vmatmul.bf16.gmra.mxu1 %v1188_v41 }
 0x19f   : > { %v1416_v4 = vsel %vm1401_vm2, %v1413_v31, %v1415_v20 }
 0x1d8   : > { %v1269_v12 = vpop.f32.mrf.mxu1 }
 0x1d9   : > { %v1270_v51 = vadd.f32 %v2551_v14, %v1269_v12 }
 0x1db   : > { %1309 = vst [vmem:[%s2029_s25] sm:$0xff] %v1270_v51  ;;  %v1458_v17 = vadd.f32 %v1404_v15, %v1270_v51  ;;  %v1417_v15 = vrot.slane %v1767_v61, 1  ;;  %v1722_v51 = vld [vmem:[%s2024_s21 + $0x38] sm:$0x1] }
 0x1dc   : > { %v1364_v6 = vunpack.c.l.bf16 %v1722_v51 }
 0x1dd   : > { %1474 = vst.msk [vmem:[%s2029_s25] sm:$0xff] %vm419_vm1, %v1458_v17  ;;  %v1432_v17 = vrot.slane %v1371_v62, 1 }
 0x1e0   : > { %v1271_v1 = vpop.f32.mrf.mxu1 }
 0x1e1   : > { %v1272_v28 = vadd.f32 %v2551_v14, %v1271_v1 }
 0x1e3   : > { %1310 = vst [vmem:[%s2029_s25 + $0x8] sm:$0xff] %v1272_v28  ;;  %v1459_v29 = vadd.f32 %v1406_v32, %v1272_v28  ;;  %v1419_v32 = vsel %vm1401_vm2, %v1417_v15, %v1418_v39 }
 0x1e5   : > { %1475 = vst.msk [vmem:[%s2029_s25 + $0x8] sm:$0xff] %vm419_vm1, %v1459_v29  ;;  %v1434_v29 = vsel %vm1401_vm2, %v1432_v17, %v1433_v54 }
 0x1e8   : > { %v1274_v23 = vpop.f32.mrf.mxu1 }
 0x1e9   : > { %v1275_v25 = vadd.f32 %v2551_v14, %v1274_v23  ;;  %v1420_v23 = vrot.slane %v1364_v6, 1 }
 0x1eb   : > { %1311 = vst [vmem:[%s2029_s25 + $0x10] sm:$0xff] %v1275_v25  ;;  %v1460_v55 = vadd.f32 %v1409_v18, %v1275_v25  ;;  %v1435_v25 = vrot.slane %v1373_v42, 1  ;;  %v1421_v63 = vsel %vm1401_vm2, %v1418_v39, %v1420_v23 }
 0x1ed   : > { %1476 = vst.msk [vmem:[%s2029_s25 + $0x10] sm:$0xff] %vm419_vm1, %v1460_v55  ;;  %v1780_v55 = vld [vmem:[%s2024_s21 + $0x60] sm:$0xff]   ;;  %v1436_v16 = vsel %vm1401_vm2, %v1433_v54, %v1435_v25 }
 0x1ee   : > { %v1775_v10 = vunpack.c.l.bf16 %v1780_v55 }
 0x1f0   : > { %v1276_v34 = vpop.f32.mrf.mxu1  ;;  %v1437_v31 = vrot.slane %v1775_v10, 1 }
 0x1f1   : > { %v1277_v9 = vadd.f32 %v2551_v14, %v1276_v34  ;;  %v1365_v34 = vunpack.c.l.bf16 %v1723_v57 }
 0x1f3   : > { %1312 = vst [vmem:[%s2029_s25 + $0x18] sm:$0xff] %v1277_v9  ;;  %v1461_v8 = vadd.f32 %v1411_v19, %v1277_v9  ;;  %v1366_v19 = vunpack.c.h.bf16 %v1723_v57  ;;  %v1422_v35 = vrot.slane %v1365_v34, 1 }
 0x1f5   : > { %1477 = vst.msk [vmem:[%s2029_s25 + $0x18] sm:$0xff] %vm419_vm1, %v1461_v8  ;;  %v1776_v8 = vunpack.c.h.bf16 %v1780_v55  ;;  %v1423_v30 = vrot.slane %v1366_v19, 1 }
 0x1f7   : > { %v1424_v13 = vsel %vm1401_vm2, %v1422_v35, %v1423_v30 }
 0x1f9   : > { %v1294_v27 = vpop.f32.mrf.mxu3 }
 0x1fa   : > { %v1295_v2 = vadd.f32 %v2551_v14, %v1294_v27  ;;  %v1438_v27 = vrot.slane %v1776_v8, 1 }
 0x1fb   : > { %v1279_v44 = vpop.f32.mrf.mxu1 }
 0x1fc   : > { %1319 = vst [vmem:[%s2029_s25 + $0x50] sm:$0xff] %v1295_v2  ;;  %v1468_v38 = vadd.f32 %v1429_v36, %v1295_v2  ;;  %v1280_v3 = vadd.f32 %v2551_v14, %v1279_v44  ;;  %v1734_v36 = vld [vmem:[%s2024_s21 + $0x68] sm:$0x1]  ;;  %v1367_v2 = vunpack.c.l.bf16 %v1725_v46 }
 0x1fd   : > { %v1376_v60 = vunpack.c.l.bf16 %v1734_v36 }
 0x1fe   : > { %1484 = vst.msk [vmem:[%s2029_s25 + $0x50] sm:$0xff] %vm419_vm1, %v1468_v38  ;;  %v1462_v40 = vadd.f32 %v1414_v49, %v1280_v3  ;;  %v1439_v49 = vsel %vm1401_vm2, %v1437_v31, %v1438_v27 }
 0x1ff   : > { %1313 = vst [vmem:[%s2029_s25 + $0x20] sm:$0xff] %v1280_v3 }
 0x200   : > { %1478 = vst.msk [vmem:[%s2029_s25 + $0x20] sm:$0xff] %vm419_vm1, %v1462_v40  ;;  %v1425_v40 = vrot.slane %v1367_v2, 1 }
 0x201   : > { %v1296_v56 = vpop.f32.mrf.mxu3 }
 0x202   : > { %v1297_v58 = vadd.f32 %v2551_v14, %v1296_v56  ;;  %v1440_v56 = vrot.slane %v1376_v60, 1  ;;  %v1426_v47 = vsel %vm1401_vm2, %v1423_v30, %v1425_v40 }
 0x203   : > { %v1281_v41 = vpop.f32.mrf.mxu1 }
 0x204   : > { %1320 = vst [vmem:[%s2029_s25 + $0x58] sm:$0xff] %v1297_v58  ;;  %v1469_v59 = vadd.f32 %v1431_v0, %v1297_v58  ;;  %v1282_v50 = vadd.f32 %v2551_v14, %v1281_v41 }
 0x206   : > { %1485 = vst.msk [vmem:[%s2029_s25 + $0x58] sm:$0xff] %vm419_vm1, %v1469_v59  ;;  %v1463_v12 = vadd.f32 %v1416_v4, %v1282_v50  ;;  %v1441_v59 = vsel %vm1401_vm2, %v1438_v27, %v1440_v56 }
 0x207   : > { %1314 = vst [vmem:[%s2029_s25 + $0x28] sm:$0xff] %v1282_v50 }
 0x208   : > { %1479 = vst.msk [vmem:[%s2029_s25 + $0x28] sm:$0xff] %vm419_vm1, %v1463_v12 }
 0x20b   : > { %v1284_v1 = vpop.f32.mrf.mxu1 }
 0x20c   : > { %v1285_v11 = vadd.f32 %v2551_v14, %v1284_v1 }
 0x20e   : > { %v1299_v28 = vpop.f32.mrf.mxu3  ;;  %1315 = vst [vmem:[%s2029_s25 + $0x30] sm:$0xff] %v1285_v11  ;;  %v1464_v48 = vadd.f32 %v1419_v32, %v1285_v11 }
 0x20f   : > { %v1300_v37 = vadd.f32 %v2551_v14, %v1299_v28 }
 0x210   : > { %1480 = vst.msk [vmem:[%s2029_s25 + $0x30] sm:$0xff] %vm419_vm1, %v1464_v48 }
 0x211   : > { %1321 = vst [vmem:[%s2029_s25 + $0x60] sm:$0xff] %v1300_v37  ;;  %v1470_v18 = vadd.f32 %v1434_v29, %v1300_v37 }
 0x213   : > { %1486 = vst.msk [vmem:[%s2029_s25 + $0x60] sm:$0xff] %vm419_vm1, %v1470_v18  ;;  %v1286_v45 = vpop.f32.mrf.mxu1 }
 0x214   : > { %v1287_v9 = vadd.f32 %v2551_v14, %v1286_v45 }
 0x216   : > { %v1301_v7 = vpop.f32.mrf.mxu3  ;;  %1316 = vst [vmem:[%s2029_s25 + $0x38] sm:$0xff] %v1287_v9  ;;  %v1465_v33 = vadd.f32 %v1421_v63, %v1287_v9 }
 0x217   : > { %v1302_v5 = vadd.f32 %v2551_v14, %v1301_v7 }
 0x218   : > { %1481 = vst.msk [vmem:[%s2029_s25 + $0x38] sm:$0xff] %vm419_vm1, %v1465_v33 }
 0x219   : > { %1322 = vst [vmem:[%s2029_s25 + $0x68] sm:$0xff] %v1302_v5  ;;  %v1471_v22 = vadd.f32 %v1436_v16, %v1302_v5 }
 0x21b   : > { %1487 = vst.msk [vmem:[%s2029_s25 + $0x68] sm:$0xff] %vm419_vm1, %v1471_v22  ;;  %v1289_v52 = vpop.f32.mrf.mxu1 }
 0x21c   : > { %v1290_v38 = vadd.f32 %v2551_v14, %v1289_v52 }
 0x21e   : > { %v1304_v44 = vpop.f32.mrf.mxu3  ;;  %1317 = vst [vmem:[%s2029_s25 + $0x40] sm:$0xff] %v1290_v38  ;;  %v1466_v24 = vadd.f32 %v1424_v13, %v1290_v38 }
 0x21f   : > { %v1305_v3 = vadd.f32 %v2551_v14, %v1304_v44 }
 0x220   : > { %1482 = vst.msk [vmem:[%s2029_s25 + $0x40] sm:$0xff] %vm419_vm1, %v1466_v24 }
 0x221   : > { %1323 = vst [vmem:[%s2029_s25 + $0x70] sm:$0xff] %v1305_v3  ;;  %v1472_v20 = vadd.f32 %v1439_v49, %v1305_v3 }
 0x223   : > { %1488 = vst.msk [vmem:[%s2029_s25 + $0x70] sm:$0xff] %vm419_vm1, %v1472_v20  ;;  %v1291_v0 = vpop.f32.mrf.mxu1 }
 0x224   : > { %v1292_v58 = vadd.f32 %v2551_v14, %v1291_v0 }
 0x226   : > { %v1306_v26 = vpop.f32.mrf.mxu3  ;;  %1318 = vst [vmem:[%s2029_s25 + $0x48] sm:$0xff] %v1292_v58  ;;  %v1467_v4 = vadd.f32 %v1426_v47, %v1292_v58 }
 0x227   : > { %v1307_v41 = vadd.f32 %v2551_v14, %v1306_v26 }
 0x228   : > { %1483 = vst.msk [vmem:[%s2029_s25 + $0x48] sm:$0xff] %vm419_vm1, %v1467_v4 }
 0x229   : > { %1324 = vst [vmem:[%s2029_s25 + $0x78] sm:$0xff] %v1307_v41  ;;  %v1473_v61 = vadd.f32 %v1441_v59, %v1307_v41 }
 0x22b   : > { %1489 = vst.msk [vmem:[%s2029_s25 + $0x78] sm:$0xff] %vm419_vm1, %v1473_v61 }
 0x22c PF: > { %s17_s28 = sadd.s32 1, %s1935_s28   ;;  %s2699_s24 = smov %s1927_s26 }
 0x22d   : > { %p14_p11 = scmp.ge.s32.totalorder %s17_s28, 6   ;;  %s2700_s25 = smov %s1931_s27 }
 0x22e   : > { %s2701_s26 = smov %s2704_s29  ;;  %s2702_s27 = smov %s2708_s30 }
 0x22f   :  { %16 = sbr.rel (!%p14_p11) target bundleno = 3 (0x3), region = 89 }

</bundles_post_ra>
